<compile_context>
chip_gen: v5e
topology: v5e:2x2
jax: 0.10.0
libtpu: 0.0.40
codegen_flags: <defaults>
</compile_context>

<pallas_src>
import jax
import jax.numpy as jnp
from jax.experimental import pallas as pl
from jax.experimental.pallas import tpu as pltpu

# True (PyTorch) feature sizes per layer and their padded versions.
DIMS = [7, 1024, 512, 128, 32, 4]
# Activation padding per stage: 7->16 (bf16 sublane pack), hidden dims stay
# lane-aligned (>=128), final output 4->8 lanes (narrow masked store beats the
# extra HBM bytes for this DMA-bound kernel).
PAD_DIMS = [16, 1024, 512, 128, 128, 8]
# Padded weight shapes (K_pad, N_pad).  The final weight keeps 128 output
# lanes so the last MXU op is fully lane-aligned; the kernel slices the first
# PAD_DIMS[-1] columns before the narrow output store.
W_PAD_SHAPES = [(16, 1024), (1024, 512), (512, 128), (128, 128), (128, 128)]
B_PAD_DIMS = [1024, 512, 128, 128, 8]
NUM_LAYERS = 5

# Batch rows per grid step.  The kernel is weight-DMA bound at small batch
# (~1.25 MB of bf16 weights set the latency floor), so tile_b mostly amortizes
# per-grid-step overhead and lengthens the x/out DMAs.  Per-step VMEM stays a
# few MB — comfortable even on v7x's 64 MiB.
MAX_TILE_B = 512


def _round_up(n, m):
    return ((n + m - 1) // m) * m


def _choose_batch_tiling(batch):
    """Pick (tile_b, n_tiles); tile_b is a multiple of 16 (bf16 sublane pack).

    Batches above ~32 rows always get an even number of grid steps so that
    dimension_semantics=('parallel',) can split them across v7x's two
    TensorCores; tiny batches stay single-tile.
    """
    pad_batch = _round_up(max(batch, 1), 16)
    if pad_batch <= 32:
        return pad_batch, 1
    if pad_batch <= 2 * MAX_TILE_B:
        tile_b = _round_up((pad_batch + 1) // 2, 16)
        return tile_b, 2
    n_tiles = -(-pad_batch // MAX_TILE_B)
    n_tiles += n_tiles % 2          # keep the step count even (megacore balance)
    return MAX_TILE_B, n_tiles


def _mlp_kernel(x_ref,
                w1_ref, b1_ref,
                w2_ref, b2_ref,
                w3_ref, b3_ref,
                w4_ref, b4_ref,
                w5_ref, b5_ref,
                o_ref):
    """Fused 5-layer MLP on one batch tile: relu(xW+b) x4, then final linear."""

    def layer(h, w_ref, b_ref):
        acc = jnp.dot(h, w_ref[...], preferred_element_type=jnp.float32)
        acc = jnp.maximum(acc + b_ref[...], 0.0)   # f32 bias add + ReLU
        return acc.astype(jnp.bfloat16)            # back to bf16 for the next MXU op

    h = x_ref[...]                                 # (tile_b, 16) bf16
    h = layer(h, w1_ref, b1_ref)
    h = layer(h, w2_ref, b2_ref)
    h = layer(h, w3_ref, b3_ref)
    h = layer(h, w4_ref, b4_ref)
    # Final layer: lane-aligned matmul (N=128), then slice to the narrow
    # (8-wide) output block right before the HBM writeback.  No ReLU.
    acc = jnp.dot(h, w5_ref[...], preferred_element_type=jnp.float32)
    out = acc[:, :o_ref.shape[1]] + b5_ref[...]
    o_ref[...] = out.astype(o_ref.dtype)


def prepare_params(params, weight_dtype=jnp.bfloat16):
    """One-time setup: zero-pad to the padded shapes and cast weights to bf16.

    `params` is a list of (W_(in,out), b_(out,)) pairs in f32.  Returns a flat
    tuple (w1, b1, ..., w5, b5) of padded device arrays ready for the kernel.
    """
    flat = []
    for li, (w, b) in enumerate(params):
        in_d, out_d = DIMS[li], DIMS[li + 1]
        pin, pout = W_PAD_SHAPES[li]
        w_p = jnp.zeros((pin, pout), weight_dtype)
        w_p = w_p.at[:in_d, :out_d].set(w.astype(weight_dtype))
        b_p = jnp.zeros((1, B_PAD_DIMS[li]), jnp.float32)
        b_p = b_p.at[0, :out_d].set(b.astype(jnp.float32))
        flat.append(w_p)
        flat.append(b_p)
    return tuple(flat)


@jax.jit
def ann_model_forward(x, padded_params):
    """x: (batch, 7) float32.  padded_params: output of prepare_params()."""
    batch = x.shape[0]
    tile_b, n_tiles = _choose_batch_tiling(batch)
    pad_batch = tile_b * n_tiles

    # Only x is padded per call (7 -> 16 features, batch -> tile multiple);
    # the padded copy is ~2x the real x bytes (was ~18x with 128-wide pad).
    x_p = jnp.zeros((pad_batch, PAD_DIMS[0]), jnp.bfloat16)
    x_p = x_p.at[:batch, :DIMS[0]].set(x.astype(jnp.bfloat16))

    # x/out tiles walk the batch grid; weights/biases use a constant index_map
    # so Pallas fetches them once and keeps them VMEM-resident across steps.
    x_spec = pl.BlockSpec((tile_b, PAD_DIMS[0]), lambda i: (i, 0))
    out_spec = pl.BlockSpec((tile_b, PAD_DIMS[-1]), lambda i: (i, 0))
    param_specs = [pl.BlockSpec(p.shape, lambda i: (0, 0)) for p in padded_params]

    # Consistent hint: padded flops AND padded bytes (what the hardware does).
    flops = 2 * pad_batch * sum(k * n for k, n in W_PAD_SHAPES)
    bytes_accessed = (
        x_p.size * x_p.dtype.itemsize
        + sum(p.size * p.dtype.itemsize for p in padded_params)
        + pad_batch * PAD_DIMS[-1] * 4)

    out = pl.pallas_call(
        _mlp_kernel,
        out_shape=jax.ShapeDtypeStruct((pad_batch, PAD_DIMS[-1]), jnp.float32),
        grid=(n_tiles,),
        in_specs=[x_spec] + param_specs,
        out_specs=out_spec,
        compiler_params=pltpu.CompilerParams(
            dimension_semantics=("parallel",)),
        cost_estimate=pl.CostEstimate(
            flops=flops, transcendentals=0, bytes_accessed=bytes_accessed),
    )(x_p, *padded_params)

    return out[:batch, :DIMS[-1]]


def init_params(key):
    """Deterministic parameter init (uniform, Kaiming-like bound), stored as
    (in_features, out_features) to match the kernel's `h @ W` convention."""
    params = []
    for li in range(NUM_LAYERS):
        in_d, out_d = DIMS[li], DIMS[li + 1]
        key, kw, kb = jax.random.split(key, 3)
        bound = 1.0 / jnp.sqrt(in_d)
        w = jax.random.uniform(kw, (in_d, out_d), jnp.float32, -bound, bound)
        b = jax.random.uniform(kb, (out_d,), jnp.float32, -bound, bound)
        params.append((w, b))
    return params


def reference_forward(x, params):
    """Pure-JAX reference with the same numerics as the kernel
    (bf16 weights/activations, f32 accumulation + bias + ReLU)."""
    h = x.astype(jnp.bfloat16)
    for li, (w, b) in enumerate(params):
        h = jnp.dot(h, w.astype(jnp.bfloat16),
                    preferred_element_type=jnp.float32) + b
        if li < NUM_LAYERS - 1:
            h = jnp.maximum(h, 0.0).astype(jnp.bfloat16)
    return h


if __name__ == "__main__":
    key = jax.random.PRNGKey(0)
    key, kx = jax.random.split(key)
    params = init_params(key)
    padded_params = prepare_params(params)   # one-time setup cost

    batch = 8
    x = jax.random.normal(kx, (batch, 7), jnp.float32)

    out = ann_model_forward(x, padded_params)
    out = jax.block_until_ready(out)

    ref = reference_forward(x, params)
    assert out.shape == (batch, 4), out.shape
    assert jnp.allclose(out, ref, atol=1e-2, rtol=1e-2), "mismatch vs reference"

    print("KERNEL_OK")
</pallas_src>

<mosaic_0001>
module attributes {stable_mosaic.version = 11 : i64} {
  func.func @_mlp_kernel(%arg0: i32, %arg1: memref<16x16xbf16, #tpu.memory_space<vmem>>, %arg2: memref<16x1024xbf16, #tpu.memory_space<vmem>>, %arg3: memref<1x1024xf32, #tpu.memory_space<vmem>>, %arg4: memref<1024x512xbf16, #tpu.memory_space<vmem>>, %arg5: memref<1x512xf32, #tpu.memory_space<vmem>>, %arg6: memref<512x128xbf16, #tpu.memory_space<vmem>>, %arg7: memref<1x128xf32, #tpu.memory_space<vmem>>, %arg8: memref<128x128xbf16, #tpu.memory_space<vmem>>, %arg9: memref<1x128xf32, #tpu.memory_space<vmem>>, %arg10: memref<128x128xbf16, #tpu.memory_space<vmem>>, %arg11: memref<1x8xf32, #tpu.memory_space<vmem>>, %arg12: memref<16x8xf32, #tpu.memory_space<vmem>>) attributes {dimension_semantics = [#tpu.dimension_semantics<parallel>], iteration_bounds = array<i64: 1>, scalar_prefetch = 0 : i64, scratch_operands = 0 : i64, tpu.core_type = #tpu.core_type<tc>, window_params = [{transform_indices = @transform_0, window_bounds = array<i64: 16, 16>}, {pipeline_mode = #tpu.pipeline_mode<synchronous>, transform_indices = @transform_1, window_bounds = array<i64: 16, 1024>}, {pipeline_mode = #tpu.pipeline_mode<synchronous>, transform_indices = @transform_2, window_bounds = array<i64: 1, 1024>}, {pipeline_mode = #tpu.pipeline_mode<synchronous>, transform_indices = @transform_3, window_bounds = array<i64: 1024, 512>}, {pipeline_mode = #tpu.pipeline_mode<synchronous>, transform_indices = @transform_4, window_bounds = array<i64: 1, 512>}, {pipeline_mode = #tpu.pipeline_mode<synchronous>, transform_indices = @transform_5, window_bounds = array<i64: 512, 128>}, {pipeline_mode = #tpu.pipeline_mode<synchronous>, transform_indices = @transform_6, window_bounds = array<i64: 1, 128>}, {pipeline_mode = #tpu.pipeline_mode<synchronous>, transform_indices = @transform_7, window_bounds = array<i64: 128, 128>}, {pipeline_mode = #tpu.pipeline_mode<synchronous>, transform_indices = @transform_8, window_bounds = array<i64: 1, 128>}, {pipeline_mode = #tpu.pipeline_mode<synchronous>, transform_indices = @transform_9, window_bounds = array<i64: 128, 128>}, {pipeline_mode = #tpu.pipeline_mode<synchronous>, transform_indices = @transform_10, window_bounds = array<i64: 1, 8>}, {transform_indices = @transform_11, window_bounds = array<i64: 16, 8>}]} {
    %c0 = arith.constant 0 : index
    %c0_0 = arith.constant 0 : index
    %0 = vector.load %arg1[%c0, %c0_0] : memref<16x16xbf16, #tpu.memory_space<vmem>>, vector<16x16xbf16>
    %c0_1 = arith.constant 0 : index
    %c0_2 = arith.constant 0 : index
    %1 = vector.load %arg2[%c0_1, %c0_2] : memref<16x1024xbf16, #tpu.memory_space<vmem>>, vector<16x1024xbf16>
    %cst = arith.constant dense<0.000000e+00> : vector<16x1024xf32>
    %2 = tpu.matmul %0, %1, %cst {dimension_numbers = #tpu.dot_dimension_numbers<[1], [0], [0], [1], [0, 0, 1, 1], [], []>} : vector<16x16xbf16>, vector<16x1024xbf16>, vector<16x1024xf32> -> vector<16x1024xf32>
    %c0_3 = arith.constant 0 : index
    %c0_4 = arith.constant 0 : index
    %3 = vector.load %arg3[%c0_3, %c0_4] : memref<1x1024xf32, #tpu.memory_space<vmem>>, vector<1x1024xf32>
    %4 = vector.broadcast %3 : vector<1x1024xf32> to vector<16x1024xf32>
    %5 = arith.addf %2, %4 : vector<16x1024xf32>
    %cst_5 = arith.constant 0.000000e+00 : f32
    %6 = vector.broadcast %cst_5 : f32 to vector<16x1024xf32>
    %7 = arith.maximumf %5, %6 : vector<16x1024xf32>
    %8 = arith.truncf %7 : vector<16x1024xf32> to vector<16x1024xbf16>
    %c0_6 = arith.constant 0 : index
    %c0_7 = arith.constant 0 : index
    %9 = vector.load %arg4[%c0_6, %c0_7] : memref<1024x512xbf16, #tpu.memory_space<vmem>>, vector<1024x512xbf16>
    %cst_8 = arith.constant dense<0.000000e+00> : vector<16x512xf32>
    %10 = tpu.matmul %8, %9, %cst_8 {dimension_numbers = #tpu.dot_dimension_numbers<[1], [0], [0], [1], [0, 0, 1, 1], [], []>} : vector<16x1024xbf16>, vector<1024x512xbf16>, vector<16x512xf32> -> vector<16x512xf32>
    %c0_9 = arith.constant 0 : index
    %c0_10 = arith.constant 0 : index
    %11 = vector.load %arg5[%c0_9, %c0_10] : memref<1x512xf32, #tpu.memory_space<vmem>>, vector<1x512xf32>
    %12 = vector.broadcast %11 : vector<1x512xf32> to vector<16x512xf32>
    %13 = arith.addf %10, %12 : vector<16x512xf32>
    %cst_11 = arith.constant 0.000000e+00 : f32
    %14 = vector.broadcast %cst_11 : f32 to vector<16x512xf32>
    %15 = arith.maximumf %13, %14 : vector<16x512xf32>
    %16 = arith.truncf %15 : vector<16x512xf32> to vector<16x512xbf16>
    %c0_12 = arith.constant 0 : index
    %c0_13 = arith.constant 0 : index
    %17 = vector.load %arg6[%c0_12, %c0_13] : memref<512x128xbf16, #tpu.memory_space<vmem>>, vector<512x128xbf16>
    %cst_14 = arith.constant dense<0.000000e+00> : vector<16x128xf32>
    %18 = tpu.matmul %16, %17, %cst_14 {dimension_numbers = #tpu.dot_dimension_numbers<[1], [0], [0], [1], [0, 0, 1, 1], [], []>} : vector<16x512xbf16>, vector<512x128xbf16>, vector<16x128xf32> -> vector<16x128xf32>
    %c0_15 = arith.constant 0 : index
    %c0_16 = arith.constant 0 : index
    %19 = vector.load %arg7[%c0_15, %c0_16] : memref<1x128xf32, #tpu.memory_space<vmem>>, vector<1x128xf32>
    %20 = vector.broadcast %19 : vector<1x128xf32> to vector<16x128xf32>
    %21 = arith.addf %18, %20 : vector<16x128xf32>
    %cst_17 = arith.constant 0.000000e+00 : f32
    %22 = vector.broadcast %cst_17 : f32 to vector<16x128xf32>
    %23 = arith.maximumf %21, %22 : vector<16x128xf32>
    %24 = arith.truncf %23 : vector<16x128xf32> to vector<16x128xbf16>
    %c0_18 = arith.constant 0 : index
    %c0_19 = arith.constant 0 : index
    %25 = vector.load %arg8[%c0_18, %c0_19] : memref<128x128xbf16, #tpu.memory_space<vmem>>, vector<128x128xbf16>
    %cst_20 = arith.constant dense<0.000000e+00> : vector<16x128xf32>
    %26 = tpu.matmul %24, %25, %cst_20 {dimension_numbers = #tpu.dot_dimension_numbers<[1], [0], [0], [1], [0, 0, 1, 1], [], []>} : vector<16x128xbf16>, vector<128x128xbf16>, vector<16x128xf32> -> vector<16x128xf32>
    %c0_21 = arith.constant 0 : index
    %c0_22 = arith.constant 0 : index
    %27 = vector.load %arg9[%c0_21, %c0_22] : memref<1x128xf32, #tpu.memory_space<vmem>>, vector<1x128xf32>
    %28 = vector.broadcast %27 : vector<1x128xf32> to vector<16x128xf32>
    %29 = arith.addf %26, %28 : vector<16x128xf32>
    %cst_23 = arith.constant 0.000000e+00 : f32
    %30 = vector.broadcast %cst_23 : f32 to vector<16x128xf32>
    %31 = arith.maximumf %29, %30 : vector<16x128xf32>
    %32 = arith.truncf %31 : vector<16x128xf32> to vector<16x128xbf16>
    %c0_24 = arith.constant 0 : index
    %c0_25 = arith.constant 0 : index
    %33 = vector.load %arg10[%c0_24, %c0_25] : memref<128x128xbf16, #tpu.memory_space<vmem>>, vector<128x128xbf16>
    %cst_26 = arith.constant dense<0.000000e+00> : vector<16x128xf32>
    %34 = tpu.matmul %32, %33, %cst_26 {dimension_numbers = #tpu.dot_dimension_numbers<[1], [0], [0], [1], [0, 0, 1, 1], [], []>} : vector<16x128xbf16>, vector<128x128xbf16>, vector<16x128xf32> -> vector<16x128xf32>
    %35 = vector.extract_strided_slice %34 {offsets = [0, 0], sizes = [16, 8], strides = [1, 1]} : vector<16x128xf32> to vector<16x8xf32>
    %c0_27 = arith.constant 0 : index
    %c0_28 = arith.constant 0 : index
    %36 = vector.load %arg11[%c0_27, %c0_28] : memref<1x8xf32, #tpu.memory_space<vmem>>, vector<1x8xf32>
    %37 = vector.broadcast %36 : vector<1x8xf32> to vector<16x8xf32>
    %38 = arith.addf %35, %37 : vector<16x8xf32>
    %c0_29 = arith.constant 0 : index
    %c0_30 = arith.constant 0 : index
    %39 = vector.load %arg12[%c0_29, %c0_30] : memref<16x8xf32, #tpu.memory_space<vmem>>, vector<16x8xf32>
    tpu.vector_store %arg12[%c0_29, %c0_30], %38 {strides = array<i32>} : memref<16x8xf32, #tpu.memory_space<vmem>>, vector<16x8xf32>,
    return
  }
  func.func @transform_0(%arg0: i32) -> (i32, i32) {
    %c0_i32 = arith.constant 0 : i32
    %c0_i32_0 = arith.constant 0 : i32
    return %arg0, %c0_i32 : i32, i32
  }
  func.func @transform_1(%arg0: i32) -> (i32, i32) {
    %c0_i32 = arith.constant 0 : i32
    %c0_i32_0 = arith.constant 0 : i32
    %c0_i32_1 = arith.constant 0 : i32
    return %c0_i32, %c0_i32_0 : i32, i32
  }
  func.func @transform_2(%arg0: i32) -> (i32, i32) {
    %c0_i32 = arith.constant 0 : i32
    %c0_i32_0 = arith.constant 0 : i32
    %c0_i32_1 = arith.constant 0 : i32
    return %c0_i32, %c0_i32_0 : i32, i32
  }
  func.func @transform_3(%arg0: i32) -> (i32, i32) {
    %c0_i32 = arith.constant 0 : i32
    %c0_i32_0 = arith.constant 0 : i32
    %c0_i32_1 = arith.constant 0 : i32
    return %c0_i32, %c0_i32_0 : i32, i32
  }
  func.func @transform_4(%arg0: i32) -> (i32, i32) {
    %c0_i32 = arith.constant 0 : i32
    %c0_i32_0 = arith.constant 0 : i32
    %c0_i32_1 = arith.constant 0 : i32
    return %c0_i32, %c0_i32_0 : i32, i32
  }
  func.func @transform_5(%arg0: i32) -> (i32, i32) {
    %c0_i32 = arith.constant 0 : i32
    %c0_i32_0 = arith.constant 0 : i32
    %c0_i32_1 = arith.constant 0 : i32
    return %c0_i32, %c0_i32_0 : i32, i32
  }
  func.func @transform_6(%arg0: i32) -> (i32, i32) {
    %c0_i32 = arith.constant 0 : i32
    %c0_i32_0 = arith.constant 0 : i32
    %c0_i32_1 = arith.constant 0 : i32
    return %c0_i32, %c0_i32_0 : i32, i32
  }
  func.func @transform_7(%arg0: i32) -> (i32, i32) {
    %c0_i32 = arith.constant 0 : i32
    %c0_i32_0 = arith.constant 0 : i32
    %c0_i32_1 = arith.constant 0 : i32
    return %c0_i32, %c0_i32_0 : i32, i32
  }
  func.func @transform_8(%arg0: i32) -> (i32, i32) {
    %c0_i32 = arith.constant 0 : i32
    %c0_i32_0 = arith.constant 0 : i32
    %c0_i32_1 = arith.constant 0 : i32
    return %c0_i32, %c0_i32_0 : i32, i32
  }
  func.func @transform_9(%arg0: i32) -> (i32, i32) {
    %c0_i32 = arith.constant 0 : i32
    %c0_i32_0 = arith.constant 0 : i32
    %c0_i32_1 = arith.constant 0 : i32
    return %c0_i32, %c0_i32_0 : i32, i32
  }
  func.func @transform_10(%arg0: i32) -> (i32, i32) {
    %c0_i32 = arith.constant 0 : i32
    %c0_i32_0 = arith.constant 0 : i32
    %c0_i32_1 = arith.constant 0 : i32
    return %c0_i32, %c0_i32_0 : i32, i32
  }
  func.func @transform_11(%arg0: i32) -> (i32, i32) {
    %c0_i32 = arith.constant 0 : i32
    %c0_i32_0 = arith.constant 0 : i32
    return %arg0, %c0_i32 : i32, i32
  }
}

</mosaic_0001>

<bundles_post_ra>
// kernel: ann_model_forward.1
= control target key start
LH: loop header
LB: loop body
LE: loop exit
PB: predicated region body
PF: predicated region fallthrough
CT: control target
= control target key end

     0   :  { %16 = vsyncpa [#allocation3], 0  ;;  %s4784_s0 = inlined_call_operand.vmem [shape: bf16[16,16], index: 0, kind: input, shape index: {}]   ;;  %s4785_s1 = inlined_call_operand.hbm [shape: bf16[16,1024], index: 1, kind: input, shape index: {}]   ;;  %s4786_s2 = inlined_call_operand.vmem [shape: f32[1,1024], index: 2, kind: input, shape index: {}]   ;;  %s4787_s3 = inlined_call_operand.hbm [shape: bf16[1024,512], index: 3, kind: input, shape index: {}]   ;;  %s4788_s4 = inlined_call_operand.vmem [shape: f32[1,512], index: 4, kind: input, shape index: {}]   ;;  %s4789_s5 = inlined_call_operand.hbm [shape: bf16[512,128], index: 5, kind: input, shape index: {}]   ;;  %s4790_s6 = inlined_call_operand.vmem [shape: f32[1,128], index: 6, kind: input, shape index: {}]   ;;  %s4791_s7 = inlined_call_operand.hbm [shape: bf16[128,128], index: 7, kind: input, shape index: {}]   ;;  %s4792_s8 = inlined_call_operand.vmem [shape: f32[1,128], index: 8, kind: input, shape index: {}]   ;;  %s4793_s9 = inlined_call_operand.hbm [shape: bf16[128,128], index: 9, kind: input, shape index: {}]   ;;  %s4794_s10 = inlined_call_operand.vmem [shape: f32[1,8], index: 10, kind: input, shape index: {}]   ;;  %s4795_s11 = inlined_call_operand.vmem [shape: f32[16,8], index: 11, kind: output, shape index: {}]  }
   0x1   :  { %17 = vsyncpa [#allocation5], 0  ;;  %s40_s19 = sshll.u32 %s4787_s3, 4  ;;  %s41_s19 = int_to_ptr.hbm [resolvable:$true] %s40_s19 }
   0x2   :  { %18 = vsyncpa [#allocation8], 0  ;;  %s4547_s20 = smov [#allocation4]   ;;  %s4548_s22 = smov 256  }
   0x3   :  { %s42_s21 = sshll.u32 %s4547_s20, 4  ;;  %s4549_s23 = smov 16   ;;  %s43_s21 = int_to_ptr.vmem [resolvable:$true] %s42_s21 }
   0x4   :  { %48 = dma.hbm_to_vmem [thread:$0]  %s41_s19, 32768, %s43_s21, [#allocation5], %s4548_s22, %s4548_s22, %s4549_s23  }
   0x5   :  { %s70_s26 = sshll.u32 %s4791_s7, 4  ;;  %s4550_s27 = smov [#allocation7]   ;;  %s71_s26 = int_to_ptr.hbm [resolvable:$true] %s70_s26 }
   0x6   :  { %s72_s28 = sshll.u32 %s4550_s27, 4  ;;  %s25_s12 = sshll.u32 %s4785_s1, 4  ;;  %s73_s28 = int_to_ptr.vmem [resolvable:$true] %s72_s28  ;;  %s26_s12 = int_to_ptr.hbm [resolvable:$true] %s25_s12 }
   0x7   :  { %s4551_s3 = smov 64   ;;  %s4552_s13 = smov 4  }
   0x8   :  { %78 = dma.hbm_to_vmem [thread:$0]  %s71_s26, 1024, %s73_s28, [#allocation8], %s4551_s3, %s4551_s3, %s4552_s13  }
   0x9   :  { %s4553_s14 = smov [#allocation2]   ;;  %s55_s18 = sshll.u32 %s4789_s5, 4  ;;  %s56_s18 = int_to_ptr.hbm [resolvable:$true] %s55_s18 }
   0xa   :  { %s27_s15 = sshll.u32 %s4553_s14, 4  ;;  %s4554_s7 = smov 512   ;;  %s28_s15 = int_to_ptr.vmem [resolvable:$true] %s27_s15 }
   0xb   :  { %s4555_s19 = smov 32   ;;  %s4556_s20 = smov [#allocation6]  }
   0xc   :  { %33 = dma.hbm_to_vmem [thread:$0]  %s26_s12, 1024, %s28_s15, [#allocation3], %s4554_s7, %s4554_s7, %s4555_s19  }
   0xd   :  { %s57_s21 = sshll.u32 %s4556_s20, 4  ;;  %s85_s23 = sshll.u32 %s4793_s9, 4  ;;  %s58_s21 = int_to_ptr.vmem [resolvable:$true] %s57_s21  ;;  %s86_s23 = int_to_ptr.hbm [resolvable:$true] %s85_s23 }
   0xe   :  { %63 = dma.hbm_to_vmem [thread:$0]  %s56_s18, 4096, %s58_s21, [#allocation5], %s4551_s3, %s4551_s3, %s4552_s13  }
   0xf   :  { %s4557_s24 = smov [#allocation9]  }
  0x10   :  { %s87_s25 = sshll.u32 %s4557_s24, 4  ;;  %s88_s25 = int_to_ptr.vmem [resolvable:$true] %s87_s25 }
  0x11   :  { %93 = dma.hbm_to_vmem [thread:$0]  %s86_s23, 1024, %s88_s25, [#allocation8], %s4551_s3, %s4551_s3, %s4552_s13  }
  0x12   :  { %4541 = dma.done.wait [#allocation3], 1024  }
  0x13   :  { %4542 = vsyncadd [#allocation3], 4294966272 }
  0x14   :  { %4543 = dma.done.wait [#allocation5], 36864  }
  0x15   :  { %4544 = vsyncadd [#allocation5], 4294930432 }
  0x16   :  { %4545 = dma.done.wait [#allocation8], 2048  }
  0x17   :  { %4546 = vsyncadd [#allocation8], 4294965248  ;;  %v2840_v0 = vld [vmem:[#allocation2] sm:$0xf]  ;;  %v4095_v2 = vld [vmem:[#allocation2 + $0x4] sm:$0xf] }
  0x18   :  { %v4099_v1 = vld [vmem:[#allocation2 + $0x1c] sm:$0xf0]  ;;  %v2842_v4 = vld [vmem:[#allocation2 + $0x20] sm:$0xf0]  ;;  %vm190_vm0 = vcmask 130048   ;;  %vm2824_vm1 = vcmask 64512  }
  0x19   :  { %v2841_v3 = vor.u32 %v4099_v1, %v2840_v0  ;;  %v4636_v5 = vld [vmem:[%s4784_s0] sm:$0xff]  ;;  %v2848_v6 = vld [vmem:[#allocation2 + $0x8] sm:$0xf]  ;;  %v2845_v7 = vor.u32 %v4095_v2, %v2842_v4  ;;  %v4096_v9 = vld [vmem:[#allocation2 + $0xc] sm:$0xf] }
  0x1a   :  { %v4100_v8 = vld [vmem:[#allocation2 + $0x24] sm:$0xf0]  ;;  %v2850_v10 = vld [vmem:[#allocation2 + $0x28] sm:$0xf0]  ;;  %v2856_v13 = vld [vmem:[#allocation2 + $0x10] sm:$0xf] }
  0x1b   :  { %201 = vmatpush.bf16.msra.mxu2 %v2841_v3  ;;  %v2849_v11 = vor.u32 %v4100_v8, %v2848_v6  ;;  %v2853_v12 = vor.u32 %v4096_v9, %v2850_v10  ;;  %v4101_v14 = vld [vmem:[#allocation2 + $0x2c] sm:$0xf0]  ;;  %v4097_v15 = vld [vmem:[#allocation2 + $0x14] sm:$0xf]  ;;  %215 = vmatpush.bf16.msra.mxu3 %v2845_v7  ;;  %v2864_v18 = vld [vmem:[#allocation2 + $0x18] sm:$0xf] }
  0x1c   :  { %v2857_v16 = vor.u32 %v4101_v14, %v2856_v13  ;;  %v2858_v17 = vld [vmem:[#allocation2 + $0x30] sm:$0xf0]  ;;  %v4102_v19 = vld [vmem:[#allocation2 + $0x34] sm:$0xf0]  ;;  %v4098_v22 = vld [vmem:[#allocation2 + $0x1c] sm:$0xf] }
  0x1d   :  { %v2861_v20 = vor.u32 %v4097_v15, %v2858_v17  ;;  %v2865_v21 = vor.u32 %v4102_v19, %v2864_v18  ;;  %v2866_v23 = vld [vmem:[#allocation2 + $0x38] sm:$0xf0]  ;;  %v2992_v25 = vld [vmem:[#allocation4 + $0xe0] sm:$0xf]  ;;  %v4133_v26 = vld [vmem:[#allocation4 + $0xec] sm:$0xf0] }
  0x1e   :  { %2870 = vmatmul.msk.bf16.vlgmr.msra.gmra.mxu2 %vm190_vm0, %v4636_v5  ;;  %257 = vmatpush.bf16.msra.mxu0 %v2857_v16  ;;  %v2869_v24 = vor.u32 %v4098_v22, %v2866_v23  ;;  %v3120_v27 = vld [vmem:[#allocation4 + $0x1e0] sm:$0xf]  ;;  %v2993_v28 = vor.u32 %v4133_v26, %v2992_v25  ;;  %v4165_v29 = vld [vmem:[#allocation4 + $0x1ec] sm:$0xf0] }
  0x1f   :  { %229 = vmatpush.bf16.msrb.mxu2 %v2849_v11  ;;  %243 = vmatpush.bf16.msrb.mxu3 %v2853_v12  ;;  %v2976_v30 = vld [vmem:[#allocation4 + $0xc0] sm:$0xf]  ;;  %v4129_v31 = vld [vmem:[#allocation4 + $0xcc] sm:$0xf0]  ;;  %v3121_v32 = vor.u32 %v4165_v29, %v3120_v27 }
  0x20   :  { %2871 = vmatmul.msk.bf16.vlgmr.msra.gmra.mxu3 %vm190_vm0, %v4636_v5  ;;  %271 = vmatpush.bf16.msra.mxu1 %v2861_v20  ;;  %v3104_v33 = vld [vmem:[#allocation4 + $0x1c0] sm:$0xf]  ;;  %v4161_v34 = vld [vmem:[#allocation4 + $0x1cc] sm:$0xf0]  ;;  %v2977_v35 = vor.u32 %v4129_v31, %v2976_v30 }
  0x21   :  { %2874 = vmatmul.msk.bf16.vlgmr.msra.gmra.mxu0 %vm190_vm0, %v4636_v5  ;;  %v3105_v36 = vor.u32 %v4161_v34, %v3104_v33  ;;  %v2960_v37 = vld [vmem:[#allocation4 + $0xa0] sm:$0xf]  ;;  %v4125_v38 = vld [vmem:[#allocation4 + $0xac] sm:$0xf0] }
  0x22   :  { %1876 = vmatpush.bf16.msrb.mxu0 %v2993_v28  ;;  %v3088_v39 = vld [vmem:[#allocation4 + $0x1a0] sm:$0xf]  ;;  %v4157_v40 = vld [vmem:[#allocation4 + $0x1ac] sm:$0xf0]  ;;  %v2961_v41 = vor.u32 %v4125_v38, %v2960_v37 }
  0x23   :  { %285 = vmatpush.bf16.msra.mxu2 %v2865_v21  ;;  %299 = vmatpush.bf16.msra.mxu3 %v2869_v24  ;;  %v3089_v42 = vor.u32 %v4157_v40, %v3088_v39  ;;  %v2944_v43 = vld [vmem:[#allocation4 + $0x80] sm:$0xf]  ;;  %v4121_v44 = vld [vmem:[#allocation4 + $0x8c] sm:$0xf0] }
  0x24   :  { %2875 = vmatmul.msk.bf16.vlgmr.msra.gmra.mxu1 %vm190_vm0, %v4636_v5  ;;  %v3072_v45 = vld [vmem:[#allocation4 + $0x180] sm:$0xf]  ;;  %v4153_v46 = vld [vmem:[#allocation4 + $0x18c] sm:$0xf0]  ;;  %v2945_v51 = vor.u32 %v4121_v44, %v2944_v43 }
  0x25   :  { %1890 = vmatpush.bf16.msrb.mxu1 %v3121_v32  ;;  %v3248_v47 = vld [vmem:[#allocation4 + $0x2e0] sm:$0xf]  ;;  %v4197_v48 = vld [vmem:[#allocation4 + $0x2ec] sm:$0xf0]  ;;  %v3073_v52 = vor.u32 %v4153_v46, %v3072_v45 }
  0x26   :  { %1877 = vmatpush.bf16.msrb.mxu0 %v2977_v35  ;;  %v3376_v49 = vld [vmem:[#allocation4 + $0x3e0] sm:$0xf]  ;;  %v4229_v50 = vld [vmem:[#allocation4 + $0x3ec] sm:$0xf0]  ;;  %v3249_v57 = vor.u32 %v4197_v48, %v3248_v47 }
  0x27   :  { %v2928_v53 = vld [vmem:[#allocation4 + $0x60] sm:$0xf]  ;;  %v4117_v54 = vld [vmem:[#allocation4 + $0x6c] sm:$0xf0]  ;;  %v3377_v58 = vor.u32 %v4229_v50, %v3376_v49 }
  0x28   :  { %v3056_v55 = vld [vmem:[#allocation4 + $0x160] sm:$0xf]  ;;  %v4149_v56 = vld [vmem:[#allocation4 + $0x16c] sm:$0xf0]  ;;  %v2929_v63 = vor.u32 %v4117_v54, %v2928_v53 }
  0x29   :  { %1891 = vmatpush.bf16.msrb.mxu1 %v3105_v36  ;;  %v3232_v59 = vld [vmem:[#allocation4 + $0x2c0] sm:$0xf]  ;;  %v4193_v60 = vld [vmem:[#allocation4 + $0x2cc] sm:$0xf0]  ;;  %v3057_v0 = vor.u32 %v4149_v56, %v3056_v55 }
  0x2a   :  { %1878 = vmatpush.bf16.msrb.mxu0 %v2961_v41  ;;  %v3360_v61 = vld [vmem:[#allocation4 + $0x3c0] sm:$0xf]  ;;  %v4225_v62 = vld [vmem:[#allocation4 + $0x3cc] sm:$0xf0]  ;;  %v3233_v6 = vor.u32 %v4193_v60, %v3232_v59 }
  0x2b   :  { %v2912_v1 = vld [vmem:[#allocation4 + $0x40] sm:$0xf]  ;;  %v4113_v2 = vld [vmem:[#allocation4 + $0x4c] sm:$0xf0]  ;;  %v3361_v7 = vor.u32 %v4225_v62, %v3360_v61 }
  0x2c   :  { %v3040_v3 = vld [vmem:[#allocation4 + $0x140] sm:$0xf]  ;;  %v4145_v4 = vld [vmem:[#allocation4 + $0x14c] sm:$0xf0]  ;;  %v2913_v12 = vor.u32 %v4113_v2, %v2912_v1 }
  0x2d   :  { %1892 = vmatpush.bf16.msrb.mxu1 %v3089_v42  ;;  %v3216_v8 = vld [vmem:[#allocation4 + $0x2a0] sm:$0xf]  ;;  %v4189_v9 = vld [vmem:[#allocation4 + $0x2ac] sm:$0xf0]  ;;  %v3041_v13 = vor.u32 %v4145_v4, %v3040_v3 }
  0x2e   :  { %2872 = vmatmul.msk.bf16.vlgmr.msrb.gmra.mxu2 %vm190_vm0, %v4636_v5  ;;  %1879 = vmatpush.bf16.msrb.mxu0 %v2945_v51  ;;  %v3344_v10 = vld [vmem:[#allocation4 + $0x3a0] sm:$0xf]  ;;  %v4221_v11 = vld [vmem:[#allocation4 + $0x3ac] sm:$0xf0]  ;;  %v3217_v18 = vor.u32 %v4189_v9, %v3216_v8 }
  0x2f   :  { %1904 = vmatpush.bf16.msrb.mxu2 %v3249_v57  ;;  %v2896_v14 = vld [vmem:[#allocation4 + $0x20] sm:$0xf]  ;;  %v4109_v15 = vld [vmem:[#allocation4 + $0x2c] sm:$0xf0]  ;;  %v3345_v19 = vor.u32 %v4221_v11, %v3344_v10 }
  0x30   :  { %2873 = vmatmul.msk.bf16.vlgmr.msrb.gmra.mxu3 %vm190_vm0, %v4636_v5  ;;  %v3024_v16 = vld [vmem:[#allocation4 + $0x120] sm:$0xf]  ;;  %v4141_v17 = vld [vmem:[#allocation4 + $0x12c] sm:$0xf0]  ;;  %v2897_v24 = vor.u32 %v4109_v15, %v2896_v14 }
  0x31   :  { %1893 = vmatpush.bf16.msrb.mxu1 %v3073_v52  ;;  %1918 = vmatpush.bf16.msrb.mxu3 %v3377_v58  ;;  %v3200_v20 = vld [vmem:[#allocation4 + $0x280] sm:$0xf]  ;;  %v4185_v21 = vld [vmem:[#allocation4 + $0x28c] sm:$0xf0]  ;;  %v3025_v25 = vor.u32 %v4141_v17, %v3024_v16 }
  0x32   :  { %1880 = vmatpush.bf16.msrb.mxu0 %v2929_v63  ;;  %v3328_v22 = vld [vmem:[#allocation4 + $0x380] sm:$0xf]  ;;  %v4217_v23 = vld [vmem:[#allocation4 + $0x38c] sm:$0xf0]  ;;  %v3201_v30 = vor.u32 %v4185_v21, %v3200_v20 }
  0x33   :  { %1905 = vmatpush.bf16.msrb.mxu2 %v3233_v6  ;;  %v2880_v26 = vld [vmem:[#allocation4] sm:$0xf]  ;;  %v4105_v27 = vld [vmem:[#allocation4 + $0xc] sm:$0xf0]  ;;  %v3329_v31 = vor.u32 %v4217_v23, %v3328_v22 }
  0x34   :  { %v3008_v28 = vld [vmem:[#allocation4 + $0x100] sm:$0xf]  ;;  %v4137_v29 = vld [vmem:[#allocation4 + $0x10c] sm:$0xf0]  ;;  %v2881_v37 = vor.u32 %v4105_v27, %v2880_v26 }
  0x35   :  { %1894 = vmatpush.bf16.msrb.mxu1 %v3057_v0  ;;  %1919 = vmatpush.bf16.msrb.mxu3 %v3361_v7  ;;  %v3504_v32 = vld [vmem:[#allocation4 + $0x4e0] sm:$0xf]  ;;  %v4261_v33 = vld [vmem:[#allocation4 + $0x4ec] sm:$0xf0]  ;;  %v3009_v41 = vor.u32 %v4137_v29, %v3008_v28 }
  0x36   :  { %1881 = vmatpush.bf16.msrb.mxu0 %v2913_v12  ;;  %v3632_v34 = vld [vmem:[#allocation4 + $0x5e0] sm:$0xf]  ;;  %v4293_v35 = vld [vmem:[#allocation4 + $0x5ec] sm:$0xf0]  ;;  %v3505_v42 = vor.u32 %v4261_v33, %v3504_v32 }
  0x37   :  { %1906 = vmatpush.bf16.msrb.mxu2 %v3217_v18  ;;  %v3184_v36 = vld [vmem:[#allocation4 + $0x260] sm:$0xf]  ;;  %v4181_v38 = vld [vmem:[#allocation4 + $0x26c] sm:$0xf0]  ;;  %v3633_v43 = vor.u32 %v4293_v35, %v3632_v34 }
  0x38   :  { %v3312_v39 = vld [vmem:[#allocation4 + $0x360] sm:$0xf]  ;;  %v4213_v40 = vld [vmem:[#allocation4 + $0x36c] sm:$0xf0]  ;;  %v3185_v46 = vor.u32 %v4181_v38, %v3184_v36 }
  0x39   :  { %1895 = vmatpush.bf16.msrb.mxu1 %v3041_v13  ;;  %1920 = vmatpush.bf16.msrb.mxu3 %v3345_v19  ;;  %v3488_v44 = vld [vmem:[#allocation4 + $0x4c0] sm:$0xf]  ;;  %v4257_v45 = vld [vmem:[#allocation4 + $0x4cc] sm:$0xf0]  ;;  %v3313_v47 = vor.u32 %v4213_v40, %v3312_v39 }
  0x3a   :  { %1882 = vmatpush.bf16.msrb.mxu0 %v2897_v24  ;;  %v3616_v48 = vld [vmem:[#allocation4 + $0x5c0] sm:$0xf]  ;;  %v4289_v49 = vld [vmem:[#allocation4 + $0x5cc] sm:$0xf0]  ;;  %v3489_v54 = vor.u32 %v4257_v45, %v3488_v44 }
  0x3b   :  { %1907 = vmatpush.bf16.msrb.mxu2 %v3201_v30  ;;  %v3168_v50 = vld [vmem:[#allocation4 + $0x240] sm:$0xf]  ;;  %v4177_v51 = vld [vmem:[#allocation4 + $0x24c] sm:$0xf0]  ;;  %v3617_v55 = vor.u32 %v4289_v49, %v3616_v48 }
  0x3c   :  { %v3296_v52 = vld [vmem:[#allocation4 + $0x340] sm:$0xf]  ;;  %v4209_v53 = vld [vmem:[#allocation4 + $0x34c] sm:$0xf0]  ;;  %v3169_v58 = vor.u32 %v4177_v51, %v3168_v50 }
  0x3d   :  { %1896 = vmatpush.bf16.msrb.mxu1 %v3025_v25  ;;  %1921 = vmatpush.bf16.msrb.mxu3 %v3329_v31  ;;  %v3472_v56 = vld [vmem:[#allocation4 + $0x4a0] sm:$0xf]  ;;  %v4253_v57 = vld [vmem:[#allocation4 + $0x4ac] sm:$0xf0]  ;;  %v3297_v59 = vor.u32 %v4209_v53, %v3296_v52 }
  0x3e   :  { %2876 = vmatmul.msk.bf16.vlgmr.msra.gmra.mxu2 %vm190_vm0, %v4636_v5  ;;  %1883 = vmatpush.bf16.msrb.mxu0 %v2881_v37  ;;  %v3600_v60 = vld [vmem:[#allocation4 + $0x5a0] sm:$0xf]  ;;  %v4285_v61 = vld [vmem:[#allocation4 + $0x5ac] sm:$0xf0] }
  0x3f   :  { %1908 = vmatpush.bf16.msrb.mxu2 %v3185_v46  ;;  %v3152_v62 = vld [vmem:[#allocation4 + $0x220] sm:$0xf]  ;;  %v4173_v63 = vld [vmem:[#allocation4 + $0x22c] sm:$0xf0]  ;;  %v3601_v2 = vor.u32 %v4285_v61, %v3600_v60 }
  0x40   :  { %2877 = vmatmul.msk.bf16.vlgmr.msra.gmra.mxu3 %vm190_vm0, %v4636_v5  ;;  %v3280_v0 = vld [vmem:[#allocation4 + $0x320] sm:$0xf]  ;;  %v4205_v1 = vld [vmem:[#allocation4 + $0x32c] sm:$0xf0]  ;;  %v3473_v5 = vor.u32 %v4253_v57, %v3472_v56  ;;  %v3153_v4 = vor.u32 %v4173_v63, %v3152_v62 }
  0x41   :  { %1897 = vmatpush.bf16.msrb.mxu1 %v3009_v41  ;;  %1922 = vmatpush.bf16.msrb.mxu3 %v3313_v47  ;;  %v3456_v3 = vld [vmem:[#allocation4 + $0x480] sm:$0xf]  ;;  %v3281_v6 = vor.u32 %v4205_v1, %v3280_v0  ;;  %v4249_v7 = vld [vmem:[#allocation4 + $0x48c] sm:$0xf0] }
  0x42   :  { %1932 = vmatpush.bf16.msra.mxu0 %v3505_v42  ;;  %v3584_v8 = vld [vmem:[#allocation4 + $0x580] sm:$0xf]  ;;  %v4281_v9 = vld [vmem:[#allocation4 + $0x58c] sm:$0xf0]  ;;  %v3457_v10 = vor.u32 %v4249_v7, %v3456_v3 }
  0x43   :  { %1909 = vmatpush.bf16.msrb.mxu2 %v3169_v58  ;;  %v3585_v11 = vor.u32 %v4281_v9, %v3584_v8  ;;  %v3136_v12 = vld [vmem:[#allocation4 + $0x200] sm:$0xf]  ;;  %v4169_v13 = vld [vmem:[#allocation4 + $0x20c] sm:$0xf0] }
  0x44   :  { %v3264_v14 = vld [vmem:[#allocation4 + $0x300] sm:$0xf]  ;;  %v3137_v15 = vor.u32 %v4169_v13, %v3136_v12  ;;  %v4201_v16 = vld [vmem:[#allocation4 + $0x30c] sm:$0xf0] }
  0x45   :  { %1946 = vmatpush.bf16.msra.mxu1 %v3633_v43  ;;  %1923 = vmatpush.bf16.msrb.mxu3 %v3297_v59  ;;  %v3440_v17 = vld [vmem:[#allocation4 + $0x460] sm:$0xf]  ;;  %v4245_v18 = vld [vmem:[#allocation4 + $0x46c] sm:$0xf0]  ;;  %v3265_v19 = vor.u32 %v4201_v16, %v3264_v14 }
  0x46   :  { %1933 = vmatpush.bf16.msra.mxu0 %v3489_v54  ;;  %v3441_v20 = vor.u32 %v4245_v18, %v3440_v17  ;;  %v3568_v21 = vld [vmem:[#allocation4 + $0x560] sm:$0xf]  ;;  %v4277_v22 = vld [vmem:[#allocation4 + $0x56c] sm:$0xf0] }
  0x47   :  { %1910 = vmatpush.bf16.msrb.mxu2 %v3153_v4  ;;  %v3760_v23 = vld [vmem:[#allocation4 + $0x6e0] sm:$0xf]  ;;  %v3569_v24 = vor.u32 %v4277_v22, %v3568_v21  ;;  %v4325_v25 = vld [vmem:[#allocation4 + $0x6ec] sm:$0xf0] }
  0x48   :  { %v3888_v26 = vld [vmem:[#allocation4 + $0x7e0] sm:$0xf]  ;;  %v3761_v27 = vor.u32 %v4325_v25, %v3760_v23  ;;  %v4357_v28 = vld [vmem:[#allocation4 + $0x7ec] sm:$0xf0] }
  0x49   :  { %1947 = vmatpush.bf16.msra.mxu1 %v3617_v55  ;;  %1924 = vmatpush.bf16.msrb.mxu3 %v3281_v6  ;;  %v3889_v29 = vor.u32 %v4357_v28, %v3888_v26  ;;  %v3424_v30 = vld [vmem:[#allocation4 + $0x440] sm:$0xf]  ;;  %v4241_v31 = vld [vmem:[#allocation4 + $0x44c] sm:$0xf0] }
  0x4a   :  { %1934 = vmatpush.bf16.msra.mxu0 %v3473_v5  ;;  %v3552_v32 = vld [vmem:[#allocation4 + $0x540] sm:$0xf]  ;;  %v3425_v33 = vor.u32 %v4241_v31, %v3424_v30  ;;  %v4273_v34 = vld [vmem:[#allocation4 + $0x54c] sm:$0xf0] }
  0x4b   :  { %1911 = vmatpush.bf16.msrb.mxu2 %v3137_v15  ;;  %v3744_v35 = vld [vmem:[#allocation4 + $0x6c0] sm:$0xf]  ;;  %v4321_v36 = vld [vmem:[#allocation4 + $0x6cc] sm:$0xf0]  ;;  %v3553_v37 = vor.u32 %v4273_v34, %v3552_v32 }
  0x4c   :  { %v3745_v38 = vor.u32 %v4321_v36, %v3744_v35  ;;  %v3872_v39 = vld [vmem:[#allocation4 + $0x7c0] sm:$0xf]  ;;  %v4353_v40 = vld [vmem:[#allocation4 + $0x7cc] sm:$0xf0] }
  0x4d   :  { %1948 = vmatpush.bf16.msra.mxu1 %v3601_v2  ;;  %1925 = vmatpush.bf16.msrb.mxu3 %v3265_v19  ;;  %v3873_v41 = vor.u32 %v4353_v40, %v3872_v39  ;;  %v3408_v42 = vld [vmem:[#allocation4 + $0x420] sm:$0xf]  ;;  %v4237_v43 = vld [vmem:[#allocation4 + $0x42c] sm:$0xf0]  ;;  %v2994_v39 = vld [vmem:[#allocation4 + $0xf0] sm:$0xf0] }
  0x4e   :  { %1935 = vmatpush.bf16.msra.mxu0 %v3457_v10  ;;  %v3536_v44 = vld [vmem:[#allocation4 + $0x520] sm:$0xf]  ;;  %v3409_v45 = vor.u32 %v4237_v43, %v3408_v42  ;;  %v4269_v46 = vld [vmem:[#allocation4 + $0x52c] sm:$0xf0]  ;;  %v3122_v42 = vld [vmem:[#allocation4 + $0x1f0] sm:$0xf0] }
  0x4f   :  { %1960 = vmatpush.bf16.msra.mxu2 %v3761_v27  ;;  %v3728_v47 = vld [vmem:[#allocation4 + $0x6a0] sm:$0xf]  ;;  %v4317_v48 = vld [vmem:[#allocation4 + $0x6ac] sm:$0xf0]  ;;  %v3537_v49 = vor.u32 %v4269_v46, %v3536_v44 }
  0x50   :  { %v3729_v50 = vor.u32 %v4317_v48, %v3728_v47  ;;  %v3856_v51 = vld [vmem:[#allocation4 + $0x7a0] sm:$0xf]  ;;  %v4349_v52 = vld [vmem:[#allocation4 + $0x7ac] sm:$0xf0] }
  0x51   :  { %1949 = vmatpush.bf16.msra.mxu1 %v3585_v11  ;;  %1974 = vmatpush.bf16.msra.mxu3 %v3889_v29  ;;  %v3857_v53 = vor.u32 %v4349_v52, %v3856_v51  ;;  %v3392_v54 = vld [vmem:[#allocation4 + $0x400] sm:$0xf]  ;;  %v4233_v55 = vld [vmem:[#allocation4 + $0x40c] sm:$0xf0]  ;;  %v2978_v51 = vld [vmem:[#allocation4 + $0xd0] sm:$0xf0] }
  0x52   :  { %1936 = vmatpush.bf16.msra.mxu0 %v3441_v20  ;;  %v3520_v56 = vld [vmem:[#allocation4 + $0x500] sm:$0xf]  ;;  %v3393_v57 = vor.u32 %v4233_v55, %v3392_v54  ;;  %v4265_v58 = vld [vmem:[#allocation4 + $0x50c] sm:$0xf0]  ;;  %v3106_v54 = vld [vmem:[#allocation4 + $0x1d0] sm:$0xf0] }
  0x53   :  { %1961 = vmatpush.bf16.msra.mxu2 %v3745_v38  ;;  %v3712_v59 = vld [vmem:[#allocation4 + $0x680] sm:$0xf]  ;;  %v4313_v60 = vld [vmem:[#allocation4 + $0x68c] sm:$0xf0]  ;;  %v3521_v61 = vor.u32 %v4265_v58, %v3520_v56  ;;  %v4131_v38 = vld [vmem:[#allocation4 + $0xe4] sm:$0xf] }
  0x54   :  { %v3713_v62 = vor.u32 %v4313_v60, %v3712_v59  ;;  %v3840_v63 = vld [vmem:[#allocation4 + $0x780] sm:$0xf]  ;;  %v4345_v0 = vld [vmem:[#allocation4 + $0x78c] sm:$0xf0]  ;;  %v2997_v47 = vor.u32 %v4131_v38, %v2994_v39  ;;  %v3378_v38 = vld [vmem:[#allocation4 + $0x3f0] sm:$0xf0] }
  0x55   :  { %1950 = vmatpush.bf16.msra.mxu1 %v3569_v24  ;;  %1975 = vmatpush.bf16.msra.mxu3 %v3873_v41  ;;  %v3841_v1 = vor.u32 %v4345_v0, %v3840_v63  ;;  %v3696_v5 = vld [vmem:[#allocation4 + $0x660] sm:$0xf]  ;;  %v4309_v2 = vld [vmem:[#allocation4 + $0x66c] sm:$0xf0]  ;;  %v4163_v41 = vld [vmem:[#allocation4 + $0x1e4] sm:$0xf] }
  0x56   :  { %1937 = vmatpush.bf16.msra.mxu0 %v3425_v33  ;;  %v3697_v3 = vor.u32 %v4309_v2, %v3696_v5  ;;  %v3824_v4 = vld [vmem:[#allocation4 + $0x760] sm:$0xf]  ;;  %v4341_v6 = vld [vmem:[#allocation4 + $0x76c] sm:$0xf0]  ;;  %v2962_v63 = vld [vmem:[#allocation4 + $0xb0] sm:$0xf0] }
  0x57   :  { %1962 = vmatpush.bf16.msra.mxu2 %v3729_v50  ;;  %v3825_v7 = vor.u32 %v4341_v6, %v3824_v4  ;;  %v3680_v8 = vld [vmem:[#allocation4 + $0x640] sm:$0xf]  ;;  %v4305_v9 = vld [vmem:[#allocation4 + $0x64c] sm:$0xf0]  ;;  %v4127_v50 = vld [vmem:[#allocation4 + $0xc4] sm:$0xf] }
  0x58   :  { %v3808_v10 = vld [vmem:[#allocation4 + $0x740] sm:$0xf]  ;;  %v3681_v11 = vor.u32 %v4305_v9, %v3680_v8  ;;  %v4337_v12 = vld [vmem:[#allocation4 + $0x74c] sm:$0xf0]  ;;  %v2981_v58 = vor.u32 %v4127_v50, %v2978_v51  ;;  %v3090_v5 = vld [vmem:[#allocation4 + $0x1b0] sm:$0xf0] }
  0x59   :  { %1951 = vmatpush.bf16.msra.mxu1 %v3553_v37  ;;  %1976 = vmatpush.bf16.msra.mxu3 %v3857_v53  ;;  %v3809_v13 = vor.u32 %v4337_v12, %v3808_v10  ;;  %v3664_v14 = vld [vmem:[#allocation4 + $0x620] sm:$0xf]  ;;  %v4301_v15 = vld [vmem:[#allocation4 + $0x62c] sm:$0xf0]  ;;  %v4159_v53 = vld [vmem:[#allocation4 + $0x1c4] sm:$0xf] }
  0x5a   :  { %1938 = vmatpush.bf16.msra.mxu0 %v3409_v45  ;;  %v3792_v16 = vld [vmem:[#allocation4 + $0x720] sm:$0xf]  ;;  %v3665_v17 = vor.u32 %v4301_v15, %v3664_v14  ;;  %v4333_v18 = vld [vmem:[#allocation4 + $0x72c] sm:$0xf0]  ;;  %v2946_v12 = vld [vmem:[#allocation4 + $0x90] sm:$0xf0] }
  0x5b   :  { %1963 = vmatpush.bf16.msra.mxu2 %v3713_v62  ;;  %v3793_v19 = vor.u32 %v4333_v18, %v3792_v16  ;;  %v3648_v20 = vld [vmem:[#allocation4 + $0x600] sm:$0xf]  ;;  %v4297_v21 = vld [vmem:[#allocation4 + $0x60c] sm:$0xf0]  ;;  %v4123_v62 = vld [vmem:[#allocation4 + $0xa4] sm:$0xf] }
  0x5c   :  { %v3776_v22 = vld [vmem:[#allocation4 + $0x700] sm:$0xf]  ;;  %v3649_v23 = vor.u32 %v4297_v21, %v3648_v20  ;;  %v4329_v24 = vld [vmem:[#allocation4 + $0x70c] sm:$0xf0]  ;;  %v2965_v8 = vor.u32 %v4123_v62, %v2962_v63  ;;  %v3074_v14 = vld [vmem:[#allocation4 + $0x190] sm:$0xf0] }
  0x5d   :  { %1952 = vmatpush.bf16.msra.mxu1 %v3537_v49  ;;  %1977 = vmatpush.bf16.msra.mxu3 %v3841_v1  ;;  %v3777_v25 = vor.u32 %v4329_v24, %v3776_v22  ;;  %v4657_v26 = vld [vmem:[%s4786_s2] sm:$0xff]  ;;  %v3125_v49 = vor.u32 %v4163_v41, %v3122_v42 }
  0x5e   :  { %1939 = vmatpush.bf16.msra.mxu0 %v3393_v57  ;;  %v129_v29 = vperm.slane %v4657_v26, 0  ;;  %v130_v30 = vperm.slane %v4657_v26, 1  ;;  %v133_v55 = vperm.slane %v4657_v26, 4  ;;  %v134_v57 = vperm.slane %v4657_v26, 5  ;;  %v4155_v1 = vld [vmem:[#allocation4 + $0x1a4] sm:$0xf] }
  0x5f   :  { %1964 = vmatpush.bf16.msra.mxu2 %v3697_v3  ;;  %v131_v2 = vperm.slane %v4657_v26, 2  ;;  %v132_v6 = vperm.slane %v4657_v26, 3  ;;  %v3093_v10 = vor.u32 %v4155_v1, %v3090_v5  ;;  %v4143_v51 = vld [vmem:[#allocation4 + $0x144] sm:$0xf]  ;;  %v2898_v1 = vld [vmem:[#allocation4 + $0x30] sm:$0xf0] }
  0x61   :  { %1953 = vmatpush.bf16.msra.mxu1 %v3521_v61  ;;  %1978 = vmatpush.bf16.msra.mxu3 %v3825_v7  ;;  %v3109_v61 = vor.u32 %v4159_v53, %v3106_v54  ;;  %v3042_v53 = vld [vmem:[#allocation4 + $0x150] sm:$0xf0]  ;;  %v4191_v54 = vld [vmem:[#allocation4 + $0x2c4] sm:$0xf] }
  0x62   :  { %v3045_v63 = vor.u32 %v4143_v51, %v3042_v53  ;;  %v3490_v51 = vld [vmem:[#allocation4 + $0x4d0] sm:$0xf0] }
  0x63   :  { %1965 = vmatpush.bf16.msra.mxu2 %v3681_v11  ;;  %v4119_v11 = vld [vmem:[#allocation4 + $0x84] sm:$0xf] }
  0x64   :  { %v2949_v22 = vor.u32 %v4119_v11, %v2946_v12  ;;  %v4103_v12 = vld [vmem:[#allocation4 + $0x4] sm:$0xf] }
  0x65   :  { %1979 = vmatpush.bf16.msra.mxu3 %v3809_v13  ;;  %v4151_v13 = vld [vmem:[#allocation4 + $0x184] sm:$0xf] }
  0x67   :  { %1966 = vmatpush.bf16.msra.mxu2 %v3665_v17 }
  0x69   :  { %1980 = vmatpush.bf16.msra.mxu3 %v3793_v19 }
  0x6b   :  { %1967 = vmatpush.bf16.msra.mxu2 %v3649_v23 }
  0x6d   :  { %1981 = vmatpush.bf16.msra.mxu3 %v3777_v25  ;;  %v3077_v25 = vor.u32 %v4151_v13, %v3074_v14  ;;  %v2882_v13 = vld [vmem:[#allocation4 + $0x10] sm:$0xf0]  ;;  %v4135_v14 = vld [vmem:[#allocation4 + $0x104] sm:$0xf] }
  0x9e   :  { %v259_v31 = vpop.f32.mrf.mxu0 }
  0x9f   :  { %v260_v3 = vadd.f32 %v259_v31, %v133_v55  ;;  %v3058_v31 = vld [vmem:[#allocation4 + $0x170] sm:$0xf0] }
  0xa1   :  { %v203_v27 = vpop.f32.mrf.mxu2  ;;  %v273_v33 = vpop.f32.mrf.mxu1  ;;  %v310_v16 = vmax.f32 %v260_v3, 0.0  ;;  %v4139_v3 = vld [vmem:[#allocation4 + $0x124] sm:$0xf] }
  0xa2   :  { %v204_v32 = vadd.f32 %v203_v27, %v129_v29  ;;  %v274_v7 = vadd.f32 %v273_v33, %v134_v57  ;;  %v4115_v27 = vld [vmem:[#allocation4 + $0x64] sm:$0xf]  ;;  %v3250_v33 = vld [vmem:[#allocation4 + $0x2f0] sm:$0xf0] }
  0xa3   :  { %v217_v28 = vpop.f32.mrf.mxu3 }
  0xa4   :  { %v218_v34 = vadd.f32 %v217_v28, %v130_v30  ;;  %v306_v43 = vmax.f32 %v204_v32, 0.0  ;;  %v311_v19 = vmax.f32 %v274_v7, 0.0  ;;  %v2930_v28 = vld [vmem:[#allocation4 + $0x70] sm:$0xf0]  ;;  %v4195_v32 = vld [vmem:[#allocation4 + $0x2e4] sm:$0xf] }
  0xa5   :  { %v3218_v7 = vld [vmem:[#allocation4 + $0x2b0] sm:$0xf0] }
  0xa6   :  { %v307_v45 = vmax.f32 %v218_v34, 0.0  ;;  %v261_v59 = vpop.f32.mrf.mxu0 }
  0xa7   :  { %v262_v4 = vadd.f32 %v261_v59, %v133_v55  ;;  %v3234_v55 = vld [vmem:[#allocation4 + $0x2d0] sm:$0xf0]  ;;  %v135_v59 = vperm.slane %v4657_v26, 6 }
  0xa8   :  { %v3237_v5 = vor.u32 %v4191_v54, %v3234_v55  ;;  %v4287_v54 = vld [vmem:[#allocation4 + $0x5c4] sm:$0xf]  ;;  %v3618_v55 = vld [vmem:[#allocation4 + $0x5d0] sm:$0xf0] }
  0xa9   :  { %v205_v35 = vpop.f32.mrf.mxu2  ;;  %v275_v0 = vpop.f32.mrf.mxu1  ;;  %v318_v17 = vmax.f32 %v262_v4, 0.0  ;;  %v3026_v4 = vld [vmem:[#allocation4 + $0x130] sm:$0xf0] }
  0xaa   :  { %v206_v36 = vadd.f32 %v205_v35, %v129_v29  ;;  %v276_v9 = vadd.f32 %v275_v0, %v134_v57  ;;  %v4147_v29 = vld [vmem:[#allocation4 + $0x164] sm:$0xf]  ;;  %v3362_v57 = vld [vmem:[#allocation4 + $0x3d0] sm:$0xf0] }
  0xab   :  { %v219_v37 = vpop.f32.mrf.mxu3  ;;  %v4107_v0 = vld [vmem:[#allocation4 + $0x24] sm:$0xf] }
  0xac   :  { %v220_v40 = vadd.f32 %v219_v37, %v130_v30  ;;  %v314_v44 = vmax.f32 %v206_v36, 0.0  ;;  %v319_v21 = vmax.f32 %v276_v9, 0.0  ;;  %v4671_v36 = vpack.c.bf16 %v318_v17, %v310_v16  ;;  %v4227_v37 = vld [vmem:[#allocation4 + $0x3e4] sm:$0xf]  ;;  %v3346_v9 = vld [vmem:[#allocation4 + $0x3b0] sm:$0xf0] }
  0xad   :  { %v3381_v50 = vor.u32 %v4227_v37, %v3378_v38  ;;  %v2901_v11 = vor.u32 %v4107_v0, %v2898_v1  ;;  %v4207_v0 = vld [vmem:[#allocation4 + $0x344] sm:$0xf]  ;;  %v3298_v1 = vld [vmem:[#allocation4 + $0x350] sm:$0xf0] }
  0xae   :  { %v315_v46 = vmax.f32 %v220_v40, 0.0  ;;  %v4661_v48 = vpack.c.bf16 %v314_v44, %v306_v43  ;;  %v4673_v41 = vpack.c.bf16 %v319_v21, %v311_v19  ;;  %v2933_v43 = vor.u32 %v4115_v27, %v2930_v28  ;;  %v4183_v19 = vld [vmem:[#allocation4 + $0x284] sm:$0xf]  ;;  %v3634_v28 = vld [vmem:[#allocation4 + $0x5f0] sm:$0xf0] }
  0xaf   :  { %v3061_v44 = vor.u32 %v4147_v29, %v3058_v31  ;;  %v4215_v21 = vld [vmem:[#allocation4 + $0x384] sm:$0xf] }
  0xb0   :  { %v4663_v52 = vpack.c.bf16 %v315_v46, %v307_v45  ;;  %1884 = vmatmul.bf16.vlgmr.msrb.gmra.mxu0 %v4661_v48  ;;  %v4111_v45 = vld [vmem:[#allocation4 + $0x44] sm:$0xf]  ;;  %v2914_v46 = vld [vmem:[#allocation4 + $0x50] sm:$0xf0] }
  0xb1   :  { %1988 = vmatpush.bf16.msrb.mxu0 %v2997_v47  ;;  %v231_v56 = vpop.f32.mrf.mxu2  ;;  %v2917_v62 = vor.u32 %v4111_v45, %v2914_v46  ;;  %v4291_v27 = vld [vmem:[#allocation4 + $0x5e4] sm:$0xf] }
  0xb2   :  { %1898 = vmatmul.bf16.vlgmr.msrb.gmra.mxu1 %v4663_v52  ;;  %v232_v15 = vadd.f32 %v231_v56, %v131_v2  ;;  %v4223_v56 = vld [vmem:[#allocation4 + $0x3c4] sm:$0xf] }
  0xb3   :  { %2002 = vmatpush.bf16.msrb.mxu1 %v3125_v49  ;;  %v245_v60 = vpop.f32.mrf.mxu3  ;;  %v3253_v49 = vor.u32 %v4195_v32, %v3250_v33  ;;  %v2885_v32 = vor.u32 %v4103_v12, %v2882_v13  ;;  %v3282_v12 = vld [vmem:[#allocation4 + $0x330] sm:$0xf0]  ;;  %v4247_v13 = vld [vmem:[#allocation4 + $0x484] sm:$0xf] }
  0xb4   :  { %v246_v18 = vadd.f32 %v245_v60, %v132_v6  ;;  %v308_v34 = vmax.f32 %v232_v15, 0.0  ;;  %v136_v60 = vperm.slane %v4657_v26, 7  ;;  %v3029_v26 = vor.u32 %v4139_v3, %v3026_v4  ;;  %v4283_v3 = vld [vmem:[#allocation4 + $0x5a4] sm:$0xf]  ;;  %v3602_v4 = vld [vmem:[#allocation4 + $0x5b0] sm:$0xf0] }
  0xb5   :  { %1989 = vmatpush.bf16.msrb.mxu0 %v2981_v58 }
  0xb6   :  { %v309_v39 = vmax.f32 %v246_v18, 0.0  ;;  %v3010_v18 = vld [vmem:[#allocation4 + $0x110] sm:$0xf0] }
  0xb7   :  { %2003 = vmatpush.bf16.msrb.mxu1 %v3109_v61  ;;  %v3013_v33 = vor.u32 %v4135_v14, %v3010_v18  ;;  %v3458_v14 = vld [vmem:[#allocation4 + $0x490] sm:$0xf0] }
  0xb9   :  { %1990 = vmatpush.bf16.msrb.mxu0 %v2965_v8  ;;  %v233_v20 = vpop.f32.mrf.mxu2  ;;  %v4219_v8 = vld [vmem:[#allocation4 + $0x3a4] sm:$0xf] }
  0xba   :  { %v234_v23 = vadd.f32 %v233_v20, %v131_v2  ;;  %v3365_v2 = vor.u32 %v4223_v56, %v3362_v57  ;;  %v3349_v17 = vor.u32 %v4219_v8, %v3346_v9  ;;  %v3202_v20 = vld [vmem:[#allocation4 + $0x290] sm:$0xf0]  ;;  %v4171_v8 = vld [vmem:[#allocation4 + $0x224] sm:$0xf] }
  0xbb   :  { %2004 = vmatpush.bf16.msrb.mxu1 %v3093_v10  ;;  %v247_v24 = vpop.f32.mrf.mxu3  ;;  %v3154_v9 = vld [vmem:[#allocation4 + $0x230] sm:$0xf0] }
  0xbc   :  { %v248_v30 = vadd.f32 %v247_v24, %v132_v6  ;;  %v316_v35 = vmax.f32 %v234_v23, 0.0  ;;  %v4187_v6 = vld [vmem:[#allocation4 + $0x2a4] sm:$0xf] }
  0xbd   :  { %1991 = vmatpush.bf16.msrb.mxu0 %v2949_v22  ;;  %v3221_v16 = vor.u32 %v4187_v6, %v3218_v7  ;;  %v3330_v22 = vld [vmem:[#allocation4 + $0x390] sm:$0xf0]  ;;  %v4259_v23 = vld [vmem:[#allocation4 + $0x4e4] sm:$0xf]  ;;  %v3301_v7 = vor.u32 %v4207_v0, %v3298_v1 }
  0xbe   :  { %v317_v40 = vmax.f32 %v248_v30, 0.0  ;;  %v4675_v42 = vpack.c.bf16 %v316_v35, %v308_v34  ;;  %v4179_v34 = vld [vmem:[#allocation4 + $0x264] sm:$0xf]  ;;  %v3186_v35 = vld [vmem:[#allocation4 + $0x270] sm:$0xf0] }
  0xbf   :  { %2005 = vmatpush.bf16.msrb.mxu1 %v3077_v25  ;;  %v3506_v25 = vld [vmem:[#allocation4 + $0x4f0] sm:$0xf0]  ;;  %v4315_v0 = vld [vmem:[#allocation4 + $0x6a4] sm:$0xf] }
  0xc0   :  { %v4677_v47 = vpack.c.bf16 %v317_v40, %v309_v39  ;;  %1912 = vmatmul.bf16.vlgmr.msrb.gmra.mxu2 %v4675_v42  ;;  %1940 = vmatmul.bf16.vlgmr.msra.gmra.mxu0 %v4671_v36  ;;  %v3205_v39 = vor.u32 %v4183_v19, %v3202_v20  ;;  %v3333_v40 = vor.u32 %v4215_v21, %v3330_v22  ;;  %v4167_v19 = vld [vmem:[#allocation4 + $0x204] sm:$0xf]  ;;  %v3138_v20 = vld [vmem:[#allocation4 + $0x210] sm:$0xf0] }
  0xc1   :  { %v287_v58 = vpop.f32.mrf.mxu2  ;;  %1992 = vmatpush.bf16.msrb.mxu0 %v2933_v43  ;;  %2016 = vmatpush.bf16.msrb.mxu2 %v3253_v49  ;;  %v4211_v43 = vld [vmem:[#allocation4 + $0x364] sm:$0xf]  ;;  %v3509_v46 = vor.u32 %v4259_v23, %v3506_v25  ;;  %v3637_v49 = vor.u32 %v4291_v27, %v3634_v28  ;;  %v3461_v22 = vor.u32 %v4247_v13, %v3458_v14  ;;  %v3442_v27 = vld [vmem:[#allocation4 + $0x470] sm:$0xf0] }
  0xc2   :  { %1926 = vmatmul.bf16.vlgmr.msrb.gmra.mxu3 %v4677_v47  ;;  %1954 = vmatmul.bf16.vlgmr.msra.gmra.mxu1 %v4673_v41  ;;  %v288_v10 = vadd.f32 %v287_v58, %v135_v59  ;;  %v3189_v58 = vor.u32 %v4179_v34, %v3186_v35  ;;  %v4199_v21 = vld [vmem:[#allocation4 + $0x304] sm:$0xf]  ;;  %v3141_v34 = vor.u32 %v4167_v19, %v3138_v20  ;;  %v3730_v1 = vld [vmem:[#allocation4 + $0x6b0] sm:$0xf0] }
  0xc3   :  { %2006 = vmatpush.bf16.msrb.mxu1 %v3061_v44  ;;  %v301_v61 = vpop.f32.mrf.mxu3  ;;  %2030 = vmatpush.bf16.msrb.mxu3 %v3381_v50  ;;  %v3314_v44 = vld [vmem:[#allocation4 + $0x370] sm:$0xf0]  ;;  %v4255_v50 = vld [vmem:[#allocation4 + $0x4c4] sm:$0xf] }
  0xc4   :  { %v302_v15 = vadd.f32 %v301_v61, %v136_v60  ;;  %v312_v29 = vmax.f32 %v288_v10, 0.0  ;;  %v3170_v61 = vld [vmem:[#allocation4 + $0x250] sm:$0xf0]  ;;  %v4243_v25 = vld [vmem:[#allocation4 + $0x464] sm:$0xf] }
  0xc5   :  { %1993 = vmatpush.bf16.msrb.mxu0 %v2917_v62  ;;  %2017 = vmatpush.bf16.msrb.mxu2 %v3237_v5  ;;  %v3493_v62 = vor.u32 %v4255_v50, %v3490_v51  ;;  %v4251_v5 = vld [vmem:[#allocation4 + $0x4a4] sm:$0xf]  ;;  %v3746_v50 = vld [vmem:[#allocation4 + $0x6d0] sm:$0xf0] }
  0xc6   :  { %v313_v37 = vmax.f32 %v302_v15, 0.0  ;;  %v4279_v15 = vld [vmem:[#allocation4 + $0x584] sm:$0xf]  ;;  %v3842_v14 = vld [vmem:[#allocation4 + $0x790] sm:$0xf0] }
  0xc7   :  { %2007 = vmatpush.bf16.msrb.mxu1 %v3045_v63  ;;  %2031 = vmatpush.bf16.msrb.mxu3 %v3365_v2  ;;  %v3621_v63 = vor.u32 %v4287_v54, %v3618_v55  ;;  %v3474_v2 = vld [vmem:[#allocation4 + $0x4b0] sm:$0xf0]  ;;  %v4275_v28 = vld [vmem:[#allocation4 + $0x564] sm:$0xf] }
  0xc8   :  { %v3477_v10 = vor.u32 %v4251_v5, %v3474_v2  ;;  %v4351_v51 = vld [vmem:[#allocation4 + $0x7c4] sm:$0xf]  ;;  %v3858_v2 = vld [vmem:[#allocation4 + $0x7b0] sm:$0xf0] }
  0xc9   :  { %v289_v24 = vpop.f32.mrf.mxu2  ;;  %1994 = vmatpush.bf16.msrb.mxu0 %v2901_v11  ;;  %2018 = vmatpush.bf16.msrb.mxu2 %v3221_v16  ;;  %v3605_v11 = vor.u32 %v4283_v3, %v3602_v4  ;;  %v3586_v16 = vld [vmem:[#allocation4 + $0x590] sm:$0xf0]  ;;  %v4347_v5 = vld [vmem:[#allocation4 + $0x7a4] sm:$0xf] }
  0xca   :  { %v290_v30 = vadd.f32 %v289_v24, %v135_v59  ;;  %v3317_v59 = vor.u32 %v4211_v43, %v3314_v44  ;;  %v3589_v23 = vor.u32 %v4279_v15, %v3586_v16  ;;  %v3266_v24 = vld [vmem:[#allocation4 + $0x310] sm:$0xf0]  ;;  %v4343_v13 = vld [vmem:[#allocation4 + $0x784] sm:$0xf]  ;;  %v3000_v15 = vld [vmem:[#allocation4 + $0xe8] sm:$0xf] }
  0xcb   :  { %2008 = vmatpush.bf16.msrb.mxu1 %v3029_v26  ;;  %v303_v31 = vpop.f32.mrf.mxu3  ;;  %2032 = vmatpush.bf16.msrb.mxu3 %v3349_v17  ;;  %v4203_v26 = vld [vmem:[#allocation4 + $0x324] sm:$0xf]  ;;  %v3157_v17 = vor.u32 %v4171_v8, %v3154_v9  ;;  %v3269_v35 = vor.u32 %v4199_v21, %v3266_v24  ;;  %v3733_v9 = vor.u32 %v4315_v0, %v3730_v1  ;;  %v4134_v16 = vld [vmem:[#allocation4 + $0xf4] sm:$0xf0]  ;;  %v3698_v24 = vld [vmem:[#allocation4 + $0x670] sm:$0xf0] }
  0xcc   :  { %v304_v38 = vadd.f32 %v303_v31, %v136_v60  ;;  %v320_v45 = vmax.f32 %v290_v30, 0.0  ;;  %v4175_v60 = vld [vmem:[#allocation4 + $0x244] sm:$0xf]  ;;  %v3285_v18 = vor.u32 %v4203_v26, %v3282_v12  ;;  %v3762_v31 = vld [vmem:[#allocation4 + $0x6f0] sm:$0xf0] }
  0xcd   :  { %1995 = vmatpush.bf16.msrb.mxu0 %v2885_v32  ;;  %2019 = vmatpush.bf16.msrb.mxu2 %v3205_v39  ;;  %v3173_v6 = vor.u32 %v4175_v60, %v3170_v61  ;;  %v4323_v30 = vld [vmem:[#allocation4 + $0x6e4] sm:$0xf]  ;;  %v3714_v12 = vld [vmem:[#allocation4 + $0x690] sm:$0xf0]  ;;  %v3080_v0 = vld [vmem:[#allocation4 + $0x188] sm:$0xf] }
  0xce   :  { %v321_v53 = vmax.f32 %v304_v38, 0.0  ;;  %v4685_v56 = vpack.c.bf16 %v320_v45, %v312_v29  ;;  %v3570_v29 = vld [vmem:[#allocation4 + $0x570] sm:$0xf0]  ;;  %v4355_v32 = vld [vmem:[#allocation4 + $0x7e4] sm:$0xf]  ;;  %v3765_v43 = vor.u32 %v4323_v30, %v3762_v31 }
  0xcf   :  { %2009 = vmatpush.bf16.msrb.mxu1 %v3013_v33  ;;  %2033 = vmatpush.bf16.msrb.mxu3 %v3333_v40  ;;  %v3890_v33 = vld [vmem:[#allocation4 + $0x7f0] sm:$0xf0]  ;;  %v3573_v38 = vor.u32 %v4275_v28, %v3570_v29  ;;  %v4239_v39 = vld [vmem:[#allocation4 + $0x444] sm:$0xf]  ;;  %v2984_v30 = vld [vmem:[#allocation4 + $0xc8] sm:$0xf] }
  0xd0   :  { %v4687_v57 = vpack.c.bf16 %v321_v53, %v313_v37  ;;  %1968 = vmatmul.bf16.vlgmr.msra.gmra.mxu2 %v4685_v56  ;;  %1996 = vmatmul.bf16.vlgmr.msrb.gmra.mxu0 %v4661_v48  ;;  %v3445_v37 = vor.u32 %v4243_v25, %v3442_v27  ;;  %v3426_v40 = vld [vmem:[#allocation4 + $0x450] sm:$0xf0]  ;;  %v3893_v44 = vor.u32 %v4355_v32, %v3890_v33  ;;  %v4271_v45 = vld [vmem:[#allocation4 + $0x544] sm:$0xf]  ;;  %v4130_v31 = vld [vmem:[#allocation4 + $0xd4] sm:$0xf0] }
  0xd1   :  { %2044 = vmatpush.bf16.msra.mxu0 %v3509_v46  ;;  %2020 = vmatpush.bf16.msrb.mxu2 %v3189_v58  ;;  %v3554_v46 = vld [vmem:[#allocation4 + $0x550] sm:$0xf0]  ;;  %v3429_v54 = vor.u32 %v4239_v39, %v3426_v40  ;;  %v4235_v58 = vld [vmem:[#allocation4 + $0x424] sm:$0xf]  ;;  %v3001_v25 = vor.u32 %v4134_v16, %v3000_v15  ;;  %v3112_v32 = vld [vmem:[#allocation4 + $0x1c8] sm:$0xf]  ;;  %v2985_v39 = vor.u32 %v4130_v31, %v2984_v30 }
  0xd2   :  { %1982 = vmatmul.bf16.vlgmr.msra.gmra.mxu3 %v4687_v57  ;;  %2010 = vmatmul.bf16.vlgmr.msrb.gmra.mxu1 %v4663_v52  ;;  %v3874_v53 = vld [vmem:[#allocation4 + $0x7d0] sm:$0xf0]  ;;  %v3557_v55 = vor.u32 %v4271_v45, %v3554_v46  ;;  %v4263_v8 = vld [vmem:[#allocation4 + $0x504] sm:$0xf]  ;;  %v4162_v33 = vld [vmem:[#allocation4 + $0x1d4] sm:$0xf0] }
  0xd3   :  { %2058 = vmatpush.bf16.msra.mxu1 %v3637_v49  ;;  %2034 = vmatpush.bf16.msrb.mxu3 %v3317_v59  ;;  %v4319_v49 = vld [vmem:[#allocation4 + $0x6c4] sm:$0xf]  ;;  %v3410_v59 = vld [vmem:[#allocation4 + $0x430] sm:$0xf0]  ;;  %v3877_v61 = vor.u32 %v4351_v51, %v3874_v53  ;;  %v3113_v40 = vor.u32 %v4162_v33, %v3112_v32  ;;  %v2968_v45 = vld [vmem:[#allocation4 + $0xa8] sm:$0xf] }
  0xd4   :  { %v3749_v60 = vor.u32 %v4319_v49, %v3746_v50  ;;  %v3413_v3 = vor.u32 %v4235_v58, %v3410_v59  ;;  %v4311_v26 = vld [vmem:[#allocation4 + $0x684] sm:$0xf]  ;;  %v3826_v29 = vld [vmem:[#allocation4 + $0x770] sm:$0xf0]  ;;  %v4126_v46 = vld [vmem:[#allocation4 + $0xb4] sm:$0xf0] }
  0xd5   :  { %2045 = vmatpush.bf16.msra.mxu0 %v3493_v62  ;;  %2021 = vmatpush.bf16.msrb.mxu2 %v3173_v6  ;;  %v4267_v62 = vld [vmem:[#allocation4 + $0x524] sm:$0xf]  ;;  %v3717_v21 = vor.u32 %v4311_v26, %v3714_v12  ;;  %v3096_v49 = vld [vmem:[#allocation4 + $0x1a8] sm:$0xf]  ;;  %v4158_v50 = vld [vmem:[#allocation4 + $0x1b4] sm:$0xf0]  ;;  %v2969_v58 = vor.u32 %v4126_v46, %v2968_v45 }
  0xd6   :  { %v4231_v6 = vld [vmem:[#allocation4 + $0x404] sm:$0xf]  ;;  %v3097_v59 = vor.u32 %v4158_v50, %v3096_v49  ;;  %v4154_v1 = vld [vmem:[#allocation4 + $0x194] sm:$0xf0]  ;;  %v3064_v26 = vld [vmem:[#allocation4 + $0x168] sm:$0xf] }
  0xd7   :  { %2059 = vmatpush.bf16.msra.mxu1 %v3621_v63  ;;  %2035 = vmatpush.bf16.msrb.mxu3 %v3301_v7  ;;  %v3538_v63 = vld [vmem:[#allocation4 + $0x530] sm:$0xf0]  ;;  %v4339_v28 = vld [vmem:[#allocation4 + $0x764] sm:$0xf]  ;;  %v4150_v12 = vld [vmem:[#allocation4 + $0x174] sm:$0xf0] }
  0xd8   :  { %v3541_v4 = vor.u32 %v4267_v62, %v3538_v63  ;;  %v3394_v7 = vld [vmem:[#allocation4 + $0x410] sm:$0xf0]  ;;  %v2952_v62 = vld [vmem:[#allocation4 + $0x88] sm:$0xf]  ;;  %v4122_v63 = vld [vmem:[#allocation4 + $0x94] sm:$0xf0] }
  0xd9   :  { %2046 = vmatpush.bf16.msra.mxu0 %v3477_v10  ;;  %2022 = vmatpush.bf16.msrb.mxu2 %v3157_v17  ;;  %v3861_v10 = vor.u32 %v4347_v5, %v3858_v2  ;;  %v3128_v17 = vld [vmem:[#allocation4 + $0x1e8] sm:$0xf]  ;;  %v3397_v19 = vor.u32 %v4231_v6, %v3394_v7  ;;  %v4327_v6 = vld [vmem:[#allocation4 + $0x704] sm:$0xf]  ;;  %v2953_v7 = vor.u32 %v4122_v63, %v2952_v62  ;;  %v4230_v16 = vld [vmem:[#allocation4 + $0x3f4] sm:$0xf0] }
  0xda   :  { %v3384_v15 = vld [vmem:[#allocation4 + $0x3e8] sm:$0xf]  ;;  %v4226_v31 = vld [vmem:[#allocation4 + $0x3d4] sm:$0xf0] }
  0xdb   :  { %2060 = vmatpush.bf16.msra.mxu1 %v3605_v11  ;;  %2036 = vmatpush.bf16.msrb.mxu3 %v3285_v18  ;;  %v3522_v11 = vld [vmem:[#allocation4 + $0x510] sm:$0xf0]  ;;  %v4166_v18 = vld [vmem:[#allocation4 + $0x1f4] sm:$0xf0]  ;;  %v3368_v30 = vld [vmem:[#allocation4 + $0x3c8] sm:$0xf] }
  0xdc   :  { %v3525_v20 = vor.u32 %v4263_v8, %v3522_v11  ;;  %v3129_v27 = vor.u32 %v4166_v18, %v3128_v17  ;;  %v3081_v8 = vor.u32 %v4154_v1, %v3080_v0  ;;  %v4118_v11 = vld [vmem:[#allocation4 + $0x74] sm:$0xf0]  ;;  %v3352_v45 = vld [vmem:[#allocation4 + $0x3a8] sm:$0xf] }
  0xdd   :  { %2047 = vmatpush.bf16.msra.mxu0 %v3461_v22  ;;  %2023 = vmatpush.bf16.msrb.mxu2 %v3141_v34  ;;  %v3845_v22 = vor.u32 %v4343_v13, %v3842_v14  ;;  %v3256_v13 = vld [vmem:[#allocation4 + $0x2e8] sm:$0xf]  ;;  %v4198_v14 = vld [vmem:[#allocation4 + $0x2f4] sm:$0xf0] }
  0xde   :  { %v4222_v46 = vld [vmem:[#allocation4 + $0x3b4] sm:$0xf0]  ;;  %v3336_v62 = vld [vmem:[#allocation4 + $0x388] sm:$0xf] }
  0xdf   :  { %2061 = vmatpush.bf16.msra.mxu1 %v3589_v23  ;;  %2037 = vmatpush.bf16.msrb.mxu3 %v3269_v35  ;;  %v4307_v23 = vld [vmem:[#allocation4 + $0x664] sm:$0xf]  ;;  %v3829_v35 = vor.u32 %v4339_v28, %v3826_v29  ;;  %v3240_v28 = vld [vmem:[#allocation4 + $0x2c8] sm:$0xf]  ;;  %v4194_v29 = vld [vmem:[#allocation4 + $0x2d4] sm:$0xf0] }
  0xe0   :  { %2024 = vmatmul.bf16.vlgmr.msrb.gmra.mxu2 %v4675_v42  ;;  %v3701_v34 = vor.u32 %v4307_v23, %v3698_v24  ;;  %v3257_v23 = vor.u32 %v4198_v14, %v3256_v13  ;;  %v3385_v24 = vor.u32 %v4230_v16, %v3384_v15  ;;  %v4218_v63 = vld [vmem:[#allocation4 + $0x394] sm:$0xf0]  ;;  %v3512_v0 = vld [vmem:[#allocation4 + $0x4e8] sm:$0xf] }
  0xe1   :  { %2048 = vmatpush.bf16.msra.mxu0 %v3445_v37  ;;  %2072 = vmatpush.bf16.msra.mxu2 %v3765_v43  ;;  %v4303_v37 = vld [vmem:[#allocation4 + $0x644] sm:$0xf]  ;;  %v4262_v1 = vld [vmem:[#allocation4 + $0x4f4] sm:$0xf0]  ;;  %v3496_v13 = vld [vmem:[#allocation4 + $0x4c8] sm:$0xf] }
  0xe2   :  { %2038 = vmatmul.bf16.vlgmr.msrb.gmra.mxu3 %v4677_v47  ;;  %v4335_v43 = vld [vmem:[#allocation4 + $0x744] sm:$0xf]  ;;  %v4258_v14 = vld [vmem:[#allocation4 + $0x4d4] sm:$0xf0]  ;;  %v3624_v15 = vld [vmem:[#allocation4 + $0x5c8] sm:$0xf] }
  0xe3   :  { %2062 = vmatpush.bf16.msra.mxu1 %v3573_v38  ;;  %2086 = vmatpush.bf16.msra.mxu3 %v3893_v44  ;;  %v3682_v38 = vld [vmem:[#allocation4 + $0x650] sm:$0xf0]  ;;  %v4290_v16 = vld [vmem:[#allocation4 + $0x5d4] sm:$0xf0] }
  0xe4   :  { %v3810_v44 = vld [vmem:[#allocation4 + $0x750] sm:$0xf0]  ;;  %v3685_v51 = vor.u32 %v4303_v37, %v3682_v38  ;;  %v3241_v37 = vor.u32 %v4194_v29, %v3240_v28  ;;  %v3369_v38 = vor.u32 %v4226_v31, %v3368_v30  ;;  %v3608_v28 = vld [vmem:[#allocation4 + $0x5a8] sm:$0xf]  ;;  %v4286_v29 = vld [vmem:[#allocation4 + $0x5b4] sm:$0xf0] }
  0xe5   :  { %2049 = vmatpush.bf16.msra.mxu0 %v3429_v54  ;;  %2073 = vmatpush.bf16.msra.mxu2 %v3749_v60  ;;  %v3813_v53 = vor.u32 %v4335_v43, %v3810_v44  ;;  %v4299_v54 = vld [vmem:[#allocation4 + $0x624] sm:$0xf]  ;;  %v3224_v43 = vld [vmem:[#allocation4 + $0x2a8] sm:$0xf]  ;;  %v4190_v44 = vld [vmem:[#allocation4 + $0x2b4] sm:$0xf0] }
  0xe6   :  { %v4331_v60 = vld [vmem:[#allocation4 + $0x724] sm:$0xf] }
  0xe7   :  { %2063 = vmatpush.bf16.msra.mxu1 %v3557_v55  ;;  %2087 = vmatpush.bf16.msra.mxu3 %v3877_v61  ;;  %v3666_v55 = vld [vmem:[#allocation4 + $0x630] sm:$0xf0] }
  0xe8   :  { %v3794_v61 = vld [vmem:[#allocation4 + $0x730] sm:$0xf0]  ;;  %v3669_v5 = vor.u32 %v4299_v54, %v3666_v55  ;;  %v3016_v54 = vld [vmem:[#allocation4 + $0x108] sm:$0xf]  ;;  %v3225_v55 = vor.u32 %v4190_v44, %v3224_v43  ;;  %v4282_v44 = vld [vmem:[#allocation4 + $0x594] sm:$0xf0] }
  0xe9   :  { %2050 = vmatpush.bf16.msra.mxu0 %v3413_v3  ;;  %2074 = vmatpush.bf16.msra.mxu2 %v3733_v9  ;;  %v3797_v2 = vor.u32 %v4331_v60, %v3794_v61  ;;  %v4295_v3 = vld [vmem:[#allocation4 + $0x604] sm:$0xf]  ;;  %v3778_v9 = vld [vmem:[#allocation4 + $0x710] sm:$0xf0]  ;;  %v3208_v60 = vld [vmem:[#allocation4 + $0x288] sm:$0xf] }
  0xea   :  { %v3781_v18 = vor.u32 %v4327_v6, %v3778_v9  ;;  %v4186_v61 = vld [vmem:[#allocation4 + $0x294] sm:$0xf0]  ;;  %v3592_v43 = vld [vmem:[#allocation4 + $0x588] sm:$0xf] }
  0xeb   :  { %2064 = vmatpush.bf16.msra.mxu1 %v3541_v4  ;;  %2088 = vmatpush.bf16.msra.mxu3 %v3861_v10  ;;  %v3650_v4 = vld [vmem:[#allocation4 + $0x610] sm:$0xf0]  ;;  %v2936_v10 = vld [vmem:[#allocation4 + $0x68] sm:$0xf]  ;;  %v3209_v6 = vor.u32 %v4186_v61, %v3208_v60  ;;  %v4182_v9 = vld [vmem:[#allocation4 + $0x274] sm:$0xf0] }
  0xec   :  { %v3653_v17 = vor.u32 %v4295_v3, %v3650_v4  ;;  %v3576_v60 = vld [vmem:[#allocation4 + $0x568] sm:$0xf]  ;;  %v4278_v61 = vld [vmem:[#allocation4 + $0x574] sm:$0xf0] }
  0xed   :  { %2051 = vmatpush.bf16.msra.mxu0 %v3397_v19  ;;  %2075 = vmatpush.bf16.msra.mxu2 %v3717_v21  ;;  %v2937_v19 = vor.u32 %v4118_v11, %v2936_v10  ;;  %v2920_v21 = vld [vmem:[#allocation4 + $0x48] sm:$0xf]  ;;  %v3513_v10 = vor.u32 %v4262_v1, %v3512_v0  ;;  %v4358_v1 = vld [vmem:[#allocation4 + $0x7f4] sm:$0xf0] }
  0xee   :  { %v3896_v0 = vld [vmem:[#allocation4 + $0x7e8] sm:$0xf] }
  0xef   :  { %2065 = vmatpush.bf16.msra.mxu1 %v3525_v20  ;;  %2089 = vmatpush.bf16.msra.mxu3 %v3845_v22  ;;  %v3065_v20 = vor.u32 %v4150_v12, %v3064_v26  ;;  %v4114_v22 = vld [vmem:[#allocation4 + $0x54] sm:$0xf0]  ;;  %v3320_v26 = vld [vmem:[#allocation4 + $0x368] sm:$0xf] }
  0xf0   :  { %2052 = vmatmul.bf16.vlgmr.msra.gmra.mxu0 %v4671_v36  ;;  %v2921_v32 = vor.u32 %v4114_v22, %v2920_v21  ;;  %v4214_v12 = vld [vmem:[#allocation4 + $0x374] sm:$0xf0]  ;;  %v3497_v21 = vor.u32 %v4258_v14, %v3496_v13  ;;  %v3625_v22 = vor.u32 %v4290_v16, %v3624_v15  ;;  %v3880_v13 = vld [vmem:[#allocation4 + $0x7c8] sm:$0xf] }
  0xf1   :  { %2100 = vmatpush.bf16.msrb.mxu0 %v3001_v25  ;;  %2076 = vmatpush.bf16.msra.mxu2 %v3701_v34  ;;  %v3048_v25 = vld [vmem:[#allocation4 + $0x148] sm:$0xf]  ;;  %v4354_v14 = vld [vmem:[#allocation4 + $0x7d4] sm:$0xf0] }
  0xf2   :  { %2066 = vmatmul.bf16.vlgmr.msra.gmra.mxu1 %v4673_v41  ;;  %v2904_v34 = vld [vmem:[#allocation4 + $0x28] sm:$0xf] }
  0xf3   :  { %2114 = vmatpush.bf16.msrb.mxu1 %v3129_v27  ;;  %2090 = vmatpush.bf16.msra.mxu3 %v3829_v35  ;;  %v4146_v27 = vld [vmem:[#allocation4 + $0x154] sm:$0xf0] }
  0xf4   :  { %v3049_v33 = vor.u32 %v4146_v27, %v3048_v25  ;;  %v4110_v35 = vld [vmem:[#allocation4 + $0x34] sm:$0xf0]  ;;  %v3480_v25 = vld [vmem:[#allocation4 + $0x4a8] sm:$0xf] }
  0xf5   :  { %2101 = vmatpush.bf16.msrb.mxu0 %v2985_v39  ;;  %2077 = vmatpush.bf16.msra.mxu2 %v3685_v51  ;;  %v3032_v39 = vld [vmem:[#allocation4 + $0x128] sm:$0xf]  ;;  %v2905_v49 = vor.u32 %v4110_v35, %v2904_v34  ;;  %v4254_v27 = vld [vmem:[#allocation4 + $0x4b4] sm:$0xf0]  ;;  %v3609_v35 = vor.u32 %v4286_v29, %v3608_v28 }
  0xf6   :  { %v2888_v51 = vld [vmem:[#allocation4 + $0x8] sm:$0xf]  ;;  %v3481_v34 = vor.u32 %v4254_v27, %v3480_v25  ;;  %v4350_v27 = vld [vmem:[#allocation4 + $0x7b4] sm:$0xf0] }
  0xf7   :  { %2115 = vmatpush.bf16.msrb.mxu1 %v3113_v40  ;;  %2091 = vmatpush.bf16.msra.mxu3 %v3813_v53  ;;  %v4142_v40 = vld [vmem:[#allocation4 + $0x134] sm:$0xf0]  ;;  %v3864_v25 = vld [vmem:[#allocation4 + $0x7a8] sm:$0xf] }
  0xf8   :  { %v3033_v50 = vor.u32 %v4142_v40, %v3032_v39  ;;  %v4106_v53 = vld [vmem:[#allocation4 + $0x14] sm:$0xf0]  ;;  %v3464_v39 = vld [vmem:[#allocation4 + $0x488] sm:$0xf] }
  0xf9   :  { %2102 = vmatpush.bf16.msrb.mxu0 %v2969_v58  ;;  %2078 = vmatpush.bf16.msra.mxu2 %v3669_v5  ;;  %v3353_v58 = vor.u32 %v4222_v46, %v3352_v45  ;;  %v3640_v5 = vld [vmem:[#allocation4 + $0x5e8] sm:$0xf]  ;;  %v2889_v3 = vor.u32 %v4106_v53, %v2888_v51  ;;  %v4250_v40 = vld [vmem:[#allocation4 + $0x494] sm:$0xf0] }
  0xfa   :  { %v3272_v51 = vld [vmem:[#allocation4 + $0x308] sm:$0xf]  ;;  %v3465_v53 = vor.u32 %v4250_v40, %v3464_v39  ;;  %v4346_v40 = vld [vmem:[#allocation4 + $0x794] sm:$0xf0] }
  0xfb   :  { %2116 = vmatpush.bf16.msrb.mxu1 %v3097_v59  ;;  %2092 = vmatpush.bf16.msra.mxu3 %v3797_v2  ;;  %v4138_v59 = vld [vmem:[#allocation4 + $0x114] sm:$0xf0]  ;;  %v3848_v39 = vld [vmem:[#allocation4 + $0x788] sm:$0xf] }
  0xfc   :  { %v4294_v2 = vld [vmem:[#allocation4 + $0x5f4] sm:$0xf0]  ;;  %v3017_v4 = vor.u32 %v4138_v59, %v3016_v54  ;;  %v3593_v54 = vor.u32 %v4282_v44, %v3592_v43  ;;  %v4132_v43 = vld [vmem:[#allocation4 + $0xec] sm:$0xf]  ;;  %v3002_v44 = vld [vmem:[#allocation4 + $0xf8] sm:$0xf0] }
  0xfd   :  { %2103 = vmatpush.bf16.msrb.mxu0 %v2953_v7  ;;  %2079 = vmatpush.bf16.msra.mxu2 %v3653_v17  ;;  %v3337_v7 = vor.u32 %v4218_v63, %v3336_v62  ;;  %v3641_v11 = vor.u32 %v4294_v2, %v3640_v5  ;;  %v4246_v59 = vld [vmem:[#allocation4 + $0x474] sm:$0xf0]  ;;  %v3768_v62 = vld [vmem:[#allocation4 + $0x6e8] sm:$0xf] }
  0xfe   :  { %v4326_v63 = vld [vmem:[#allocation4 + $0x6f4] sm:$0xf0] }
  0xff   :  { %2117 = vmatpush.bf16.msrb.mxu1 %v3081_v8  ;;  %2093 = vmatpush.bf16.msra.mxu3 %v3781_v18  ;;  %v3192_v8 = vld [vmem:[#allocation4 + $0x268] sm:$0xf]  ;;  %v3321_v18 = vor.u32 %v4214_v12, %v3320_v26  ;;  %v4322_v12 = vld [vmem:[#allocation4 + $0x6d4] sm:$0xf0] }
 0x100   :  { %2080 = vmatmul.bf16.vlgmr.msra.gmra.mxu2 %v4685_v56  ;;  %v3193_v17 = vor.u32 %v4182_v9, %v3192_v8  ;;  %v3769_v8 = vor.u32 %v4326_v63, %v3768_v62  ;;  %v3897_v9 = vor.u32 %v4358_v1, %v3896_v0  ;;  %v3752_v26 = vld [vmem:[#allocation4 + $0x6c8] sm:$0xf]  ;;  %v4128_v62 = vld [vmem:[#allocation4 + $0xcc] sm:$0xf]  ;;  %v2986_v63 = vld [vmem:[#allocation4 + $0xd8] sm:$0xf0] }
 0x101   :  { %2104 = vmatpush.bf16.msrb.mxu0 %v2937_v19  ;;  %2128 = vmatpush.bf16.msrb.mxu2 %v3257_v23  ;;  %v3176_v19 = vld [vmem:[#allocation4 + $0x248] sm:$0xf]  ;;  %v4160_v0 = vld [vmem:[#allocation4 + $0x1cc] sm:$0xf]  ;;  %v3114_v1 = vld [vmem:[#allocation4 + $0x1d8] sm:$0xf0] }
 0x102   :  { %2094 = vmatmul.bf16.vlgmr.msra.gmra.mxu3 %v4687_v57  ;;  %v3304_v23 = vld [vmem:[#allocation4 + $0x348] sm:$0xf] }
 0x103   :  { %2118 = vmatpush.bf16.msrb.mxu1 %v3065_v20  ;;  %2142 = vmatpush.bf16.msrb.mxu3 %v3385_v24  ;;  %v4178_v20 = vld [vmem:[#allocation4 + $0x254] sm:$0xf0] }
 0x104   :  { %v4210_v24 = vld [vmem:[#allocation4 + $0x354] sm:$0xf0]  ;;  %v3177_v30 = vor.u32 %v4178_v20, %v3176_v19  ;;  %v3753_v19 = vor.u32 %v4322_v12, %v3752_v26  ;;  %v3881_v20 = vor.u32 %v4354_v14, %v3880_v13  ;;  %v4156_v26 = vld [vmem:[#allocation4 + $0x1ac] sm:$0xf]  ;;  %v3098_v12 = vld [vmem:[#allocation4 + $0x1b8] sm:$0xf0] }
 0x105   :  { %2105 = vmatpush.bf16.msrb.mxu0 %v2921_v32  ;;  %2129 = vmatpush.bf16.msrb.mxu2 %v3241_v37  ;;  %v3305_v31 = vor.u32 %v4210_v24, %v3304_v23  ;;  %v3160_v32 = vld [vmem:[#allocation4 + $0x228] sm:$0xf]  ;;  %v4318_v24 = vld [vmem:[#allocation4 + $0x6b4] sm:$0xf0] }
 0x106   :  { %v3288_v37 = vld [vmem:[#allocation4 + $0x328] sm:$0xf] }
 0x107   :  { %2119 = vmatpush.bf16.msrb.mxu1 %v3049_v33  ;;  %2143 = vmatpush.bf16.msrb.mxu3 %v3369_v38  ;;  %v4174_v33 = vld [vmem:[#allocation4 + $0x234] sm:$0xf0]  ;;  %v3736_v23 = vld [vmem:[#allocation4 + $0x6a8] sm:$0xf] }
 0x108   :  { %v4206_v38 = vld [vmem:[#allocation4 + $0x334] sm:$0xf0]  ;;  %v3161_v45 = vor.u32 %v4174_v33, %v3160_v32  ;;  %v3528_v32 = vld [vmem:[#allocation4 + $0x508] sm:$0xf]  ;;  %v3737_v33 = vor.u32 %v4318_v24, %v3736_v23  ;;  %v4152_v23 = vld [vmem:[#allocation4 + $0x18c] sm:$0xf] }
 0x109   :  { %2106 = vmatpush.bf16.msrb.mxu0 %v2905_v49  ;;  %2130 = vmatpush.bf16.msrb.mxu2 %v3225_v55  ;;  %v3289_v46 = vor.u32 %v4206_v38, %v3288_v37  ;;  %v3144_v49 = vld [vmem:[#allocation4 + $0x208] sm:$0xf]  ;;  %v4202_v55 = vld [vmem:[#allocation4 + $0x314] sm:$0xf0]  ;;  %v3082_v24 = vld [vmem:[#allocation4 + $0x198] sm:$0xf0] }
 0x10a   :  { %v3273_v2 = vor.u32 %v4202_v55, %v3272_v51  ;;  %v3720_v37 = vld [vmem:[#allocation4 + $0x688] sm:$0xf]  ;;  %v4314_v38 = vld [vmem:[#allocation4 + $0x694] sm:$0xf0] }
 0x10b   :  { %2120 = vmatpush.bf16.msrb.mxu1 %v3033_v50  ;;  %2144 = vmatpush.bf16.msrb.mxu3 %v3353_v58  ;;  %v4170_v50 = vld [vmem:[#allocation4 + $0x214] sm:$0xf0]  ;;  %v3448_v58 = vld [vmem:[#allocation4 + $0x468] sm:$0xf]  ;;  %v3721_v51 = vor.u32 %v4314_v38, %v3720_v37  ;;  %v4148_v37 = vld [vmem:[#allocation4 + $0x16c] sm:$0xf] }
 0x10c   :  { %v3145_v5 = vor.u32 %v4170_v50, %v3144_v49  ;;  %v4310_v55 = vld [vmem:[#allocation4 + $0x674] sm:$0xf0]  ;;  %v3066_v38 = vld [vmem:[#allocation4 + $0x178] sm:$0xf0] }
 0x10d   :  { %2107 = vmatpush.bf16.msrb.mxu0 %v2889_v3  ;;  %2131 = vmatpush.bf16.msrb.mxu2 %v3209_v6  ;;  %v3449_v3 = vor.u32 %v4246_v59, %v3448_v58  ;;  %v3432_v6 = vld [vmem:[#allocation4 + $0x448] sm:$0xf]  ;;  %v3005_v58 = vor.u32 %v4132_v43, %v3002_v44  ;;  %v4228_v43 = vld [vmem:[#allocation4 + $0x3ec] sm:$0xf]  ;;  %v3386_v44 = vld [vmem:[#allocation4 + $0x3f8] sm:$0xf0] }
 0x10f   :  { %2121 = vmatpush.bf16.msrb.mxu1 %v3017_v4  ;;  %2145 = vmatpush.bf16.msrb.mxu3 %v3337_v7  ;;  %v3577_v4 = vor.u32 %v4278_v61, %v3576_v60  ;;  %v4242_v7 = vld [vmem:[#allocation4 + $0x454] sm:$0xf0]  ;;  %v3832_v60 = vld [vmem:[#allocation4 + $0x768] sm:$0xf] }
 0x110   :  { %2108 = vmatmul.bf16.vlgmr.msrb.gmra.mxu0 %v4661_v48  ;;  %v3433_v15 = vor.u32 %v4242_v7, %v3432_v6  ;;  %v4342_v61 = vld [vmem:[#allocation4 + $0x774] sm:$0xf0]  ;;  %v2989_v6 = vor.u32 %v4128_v62, %v2986_v63  ;;  %v3117_v7 = vor.u32 %v4160_v0, %v3114_v1  ;;  %v4224_v62 = vld [vmem:[#allocation4 + $0x3cc] sm:$0xf]  ;;  %v3370_v63 = vld [vmem:[#allocation4 + $0x3d8] sm:$0xf0] }
 0x111   :  { %2156 = vmatpush.bf16.msra.mxu0 %v3513_v10  ;;  %2132 = vmatpush.bf16.msrb.mxu2 %v3193_v17  ;;  %v3560_v10 = vld [vmem:[#allocation4 + $0x548] sm:$0xf] }
 0x112   :  { %2122 = vmatmul.bf16.vlgmr.msrb.gmra.mxu1 %v4663_v52  ;;  %v3416_v17 = vld [vmem:[#allocation4 + $0x428] sm:$0xf] }
 0x113   :  { %2170 = vmatpush.bf16.msra.mxu1 %v3641_v11  ;;  %2146 = vmatpush.bf16.msrb.mxu3 %v3321_v18  ;;  %v4274_v11 = vld [vmem:[#allocation4 + $0x554] sm:$0xf0] }
 0x114   :  { %v3561_v16 = vor.u32 %v4274_v11, %v3560_v10  ;;  %v4238_v18 = vld [vmem:[#allocation4 + $0x434] sm:$0xf0]  ;;  %v4124_v10 = vld [vmem:[#allocation4 + $0xac] sm:$0xf]  ;;  %v2970_v11 = vld [vmem:[#allocation4 + $0xb8] sm:$0xf0] }
 0x115   :  { %2157 = vmatpush.bf16.msra.mxu0 %v3497_v21  ;;  %2133 = vmatpush.bf16.msrb.mxu2 %v3177_v30  ;;  %v3544_v21 = vld [vmem:[#allocation4 + $0x528] sm:$0xf]  ;;  %v3417_v28 = vor.u32 %v4238_v18, %v3416_v17  ;;  %v2973_v17 = vor.u32 %v4124_v10, %v2970_v11  ;;  %v3101_v18 = vor.u32 %v4156_v26, %v3098_v12  ;;  %v4220_v10 = vld [vmem:[#allocation4 + $0x3ac] sm:$0xf]  ;;  %v3354_v11 = vld [vmem:[#allocation4 + $0x3b8] sm:$0xf0] }
 0x116   :  { %v3400_v30 = vld [vmem:[#allocation4 + $0x408] sm:$0xf] }
 0x117   :  { %2171 = vmatpush.bf16.msra.mxu1 %v3625_v22  ;;  %2147 = vmatpush.bf16.msrb.mxu3 %v3305_v31  ;;  %v4270_v22 = vld [vmem:[#allocation4 + $0x534] sm:$0xf0] }
 0x118   :  { %v3545_v29 = vor.u32 %v4270_v22, %v3544_v21  ;;  %v4234_v31 = vld [vmem:[#allocation4 + $0x414] sm:$0xf0]  ;;  %v4120_v21 = vld [vmem:[#allocation4 + $0x8c] sm:$0xf]  ;;  %v2954_v22 = vld [vmem:[#allocation4 + $0x98] sm:$0xf0] }
 0x119   :  { %2158 = vmatpush.bf16.msra.mxu0 %v3481_v34  ;;  %2134 = vmatpush.bf16.msrb.mxu2 %v3161_v45  ;;  %v3865_v34 = vor.u32 %v4350_v27, %v3864_v25  ;;  %v4164_v45 = vld [vmem:[#allocation4 + $0x1ec] sm:$0xf]  ;;  %v3401_v49 = vor.u32 %v4234_v31, %v3400_v30  ;;  %v3784_v30 = vld [vmem:[#allocation4 + $0x708] sm:$0xf]  ;;  %v2957_v31 = vor.u32 %v4120_v21, %v2954_v22  ;;  %v3210_v21 = vld [vmem:[#allocation4 + $0x298] sm:$0xf0] }
 0x11a   :  { %v4216_v22 = vld [vmem:[#allocation4 + $0x38c] sm:$0xf] }
 0x11b   :  { %2172 = vmatpush.bf16.msra.mxu1 %v3609_v35  ;;  %2148 = vmatpush.bf16.msrb.mxu3 %v3289_v46  ;;  %v4266_v35 = vld [vmem:[#allocation4 + $0x514] sm:$0xf0]  ;;  %v3130_v46 = vld [vmem:[#allocation4 + $0x1f8] sm:$0xf0] }
 0x11c   :  { %v3529_v50 = vor.u32 %v4266_v35, %v3528_v32  ;;  %v3133_v59 = vor.u32 %v4164_v45, %v3130_v46  ;;  %v3085_v32 = vor.u32 %v4152_v23, %v3082_v24  ;;  %v2938_v35 = vld [vmem:[#allocation4 + $0x78] sm:$0xf0]  ;;  %v4260_v24 = vld [vmem:[#allocation4 + $0x4ec] sm:$0xf] }
 0x11d   :  { %2159 = vmatpush.bf16.msra.mxu0 %v3465_v53  ;;  %2135 = vmatpush.bf16.msrb.mxu2 %v3145_v5  ;;  %v3849_v53 = vor.u32 %v4346_v40, %v3848_v39  ;;  %v4196_v39 = vld [vmem:[#allocation4 + $0x2ec] sm:$0xf]  ;;  %v3258_v40 = vld [vmem:[#allocation4 + $0x2f8] sm:$0xf0] }
 0x11e   :  { %v3338_v23 = vld [vmem:[#allocation4 + $0x398] sm:$0xf0] }
 0x11f   :  { %2173 = vmatpush.bf16.msra.mxu1 %v3593_v54  ;;  %2149 = vmatpush.bf16.msrb.mxu3 %v3273_v2  ;;  %v3704_v54 = vld [vmem:[#allocation4 + $0x668] sm:$0xf]  ;;  %v3833_v2 = vor.u32 %v4342_v61, %v3832_v60  ;;  %v4192_v60 = vld [vmem:[#allocation4 + $0x2cc] sm:$0xf]  ;;  %v3242_v61 = vld [vmem:[#allocation4 + $0x2d8] sm:$0xf0] }
 0x120   :  { %2136 = vmatmul.bf16.vlgmr.msrb.gmra.mxu2 %v4675_v42  ;;  %v3705_v5 = vor.u32 %v4310_v55, %v3704_v54  ;;  %v3261_v54 = vor.u32 %v4196_v39, %v3258_v40  ;;  %v3389_v55 = vor.u32 %v4228_v43, %v3386_v44  ;;  %v3322_v39 = vld [vmem:[#allocation4 + $0x378] sm:$0xf0]  ;;  %v4256_v40 = vld [vmem:[#allocation4 + $0x4cc] sm:$0xf] }
 0x121   :  { %2160 = vmatpush.bf16.msra.mxu0 %v3449_v3  ;;  %2184 = vmatpush.bf16.msra.mxu2 %v3769_v8  ;;  %v3688_v3 = vld [vmem:[#allocation4 + $0x648] sm:$0xf]  ;;  %v3498_v44 = vld [vmem:[#allocation4 + $0x4d8] sm:$0xf0] }
 0x122   :  { %2150 = vmatmul.bf16.vlgmr.msrb.gmra.mxu3 %v4677_v47  ;;  %v3816_v8 = vld [vmem:[#allocation4 + $0x748] sm:$0xf] }
 0x123   :  { %2174 = vmatpush.bf16.msra.mxu1 %v3577_v4  ;;  %2198 = vmatpush.bf16.msra.mxu3 %v3897_v9  ;;  %v4306_v4 = vld [vmem:[#allocation4 + $0x654] sm:$0xf0] }
 0x124   :  { %v4338_v9 = vld [vmem:[#allocation4 + $0x754] sm:$0xf0]  ;;  %v3689_v13 = vor.u32 %v4306_v4, %v3688_v3  ;;  %v3245_v3 = vor.u32 %v4192_v60, %v3242_v61  ;;  %v3373_v4 = vor.u32 %v4224_v62, %v3370_v63  ;;  %v3306_v60 = vld [vmem:[#allocation4 + $0x358] sm:$0xf0]  ;;  %v4252_v61 = vld [vmem:[#allocation4 + $0x4ac] sm:$0xf] }
 0x125   :  { %2161 = vmatpush.bf16.msra.mxu0 %v3433_v15  ;;  %2185 = vmatpush.bf16.msra.mxu2 %v3753_v19  ;;  %v3817_v14 = vor.u32 %v4338_v9, %v3816_v8  ;;  %v3672_v15 = vld [vmem:[#allocation4 + $0x628] sm:$0xf]  ;;  %v4188_v8 = vld [vmem:[#allocation4 + $0x2ac] sm:$0xf]  ;;  %v3226_v9 = vld [vmem:[#allocation4 + $0x2b8] sm:$0xf0] }
 0x126   :  { %v3800_v19 = vld [vmem:[#allocation4 + $0x728] sm:$0xf] }
 0x127   :  { %2175 = vmatpush.bf16.msra.mxu1 %v3561_v16  ;;  %2199 = vmatpush.bf16.msra.mxu3 %v3881_v20  ;;  %v4302_v16 = vld [vmem:[#allocation4 + $0x634] sm:$0xf0] }
 0x128   :  { %v4334_v20 = vld [vmem:[#allocation4 + $0x734] sm:$0xf0]  ;;  %v3673_v25 = vor.u32 %v4302_v16, %v3672_v15  ;;  %v2890_v15 = vld [vmem:[#allocation4 + $0x18] sm:$0xf0]  ;;  %v4136_v16 = vld [vmem:[#allocation4 + $0x10c] sm:$0xf] }
 0x129   :  { %2162 = vmatpush.bf16.msra.mxu0 %v3417_v28  ;;  %2186 = vmatpush.bf16.msra.mxu2 %v3737_v33  ;;  %v3801_v27 = vor.u32 %v4334_v20, %v3800_v19  ;;  %v3656_v28 = vld [vmem:[#allocation4 + $0x608] sm:$0xf]  ;;  %v4330_v33 = vld [vmem:[#allocation4 + $0x714] sm:$0xf0]  ;;  %v3018_v19 = vld [vmem:[#allocation4 + $0x118] sm:$0xf0] }
 0x12a   :  { %v3785_v46 = vor.u32 %v4330_v33, %v3784_v30  ;;  %v4184_v20 = vld [vmem:[#allocation4 + $0x28c] sm:$0xf]  ;;  %v3021_v30 = vor.u32 %v4136_v16, %v3018_v19 }
 0x12b   :  { %2176 = vmatpush.bf16.msra.mxu1 %v3545_v29  ;;  %2200 = vmatpush.bf16.msra.mxu3 %v3865_v34  ;;  %v4298_v29 = vld [vmem:[#allocation4 + $0x614] sm:$0xf0]  ;;  %v4116_v34 = vld [vmem:[#allocation4 + $0x6c] sm:$0xf] }
 0x12c   :  { %v3657_v45 = vor.u32 %v4298_v29, %v3656_v28  ;;  %v3642_v28 = vld [vmem:[#allocation4 + $0x5f8] sm:$0xf0]  ;;  %v4180_v33 = vld [vmem:[#allocation4 + $0x26c] sm:$0xf] }
 0x12d   :  { %2163 = vmatpush.bf16.msra.mxu0 %v3401_v49  ;;  %2187 = vmatpush.bf16.msra.mxu2 %v3721_v51  ;;  %v2941_v49 = vor.u32 %v4116_v34, %v2938_v35  ;;  %v4112_v51 = vld [vmem:[#allocation4 + $0x4c] sm:$0xf]  ;;  %v4707_v26 = vpop.f32.mrf.mxu0  ;;  %v3194_v34 = vld [vmem:[#allocation4 + $0x278] sm:$0xf0] }
 0x12e   :  { %v4168_v16 = vld [vmem:[#allocation4 + $0x20c] sm:$0xf] }
 0x12f   :  { %2177 = vmatpush.bf16.msra.mxu1 %v3529_v50  ;;  %2201 = vmatpush.bf16.msra.mxu3 %v3849_v53  ;;  %v3069_v50 = vor.u32 %v4148_v37, %v3066_v38  ;;  %v2922_v53 = vld [vmem:[#allocation4 + $0x58] sm:$0xf0]  ;;  %v4212_v38 = vld [vmem:[#allocation4 + $0x36c] sm:$0xf]  ;;  %v4709_v43 = vpop.f32.mrf.mxu1 }
 0x130   :  { %2164 = vmatmul.bf16.vlgmr.msra.gmra.mxu0 %v4671_v36  ;;  %v2925_v0 = vor.u32 %v4112_v51, %v2922_v53  ;;  %v4176_v51 = vld [vmem:[#allocation4 + $0x24c] sm:$0xf]  ;;  %v3178_v53 = vld [vmem:[#allocation4 + $0x258] sm:$0xf0] }
 0x131   :  { %2212 = vmatpush.bf16.msrb.mxu0 %v3005_v58  ;;  %2188 = vmatpush.bf16.msra.mxu2 %v3705_v5  ;;  %v4144_v58 = vld [vmem:[#allocation4 + $0x14c] sm:$0xf] }
 0x132   :  { %2178 = vmatmul.bf16.vlgmr.msra.gmra.mxu1 %v4673_v41  ;;  %v4108_v5 = vld [vmem:[#allocation4 + $0x2c] sm:$0xf] }
 0x133   :  { %2226 = vmatpush.bf16.msrb.mxu1 %v3133_v59  ;;  %2202 = vmatpush.bf16.msra.mxu3 %v3833_v2  ;;  %v3050_v59 = vld [vmem:[#allocation4 + $0x158] sm:$0xf0] }
 0x134   :  { %v3053_v1 = vor.u32 %v4144_v58, %v3050_v59  ;;  %v2906_v2 = vld [vmem:[#allocation4 + $0x38] sm:$0xf0]  ;;  %v4208_v59 = vld [vmem:[#allocation4 + $0x34c] sm:$0xf] }
 0x135   :  { %2213 = vmatpush.bf16.msrb.mxu0 %v2989_v6  ;;  %2189 = vmatpush.bf16.msra.mxu2 %v3689_v13  ;;  %v4140_v6 = vld [vmem:[#allocation4 + $0x12c] sm:$0xf]  ;;  %v2909_v12 = vor.u32 %v4108_v5, %v2906_v2  ;;  %v3610_v5 = vld [vmem:[#allocation4 + $0x5b8] sm:$0xf0]  ;;  %v3181_v2 = vor.u32 %v4176_v51, %v3178_v53 }
 0x136   :  { %v3754_v51 = vld [vmem:[#allocation4 + $0x6d8] sm:$0xf0]  ;;  %v4352_v53 = vld [vmem:[#allocation4 + $0x7cc] sm:$0xf] }
 0x137   :  { %2227 = vmatpush.bf16.msrb.mxu1 %v3117_v7  ;;  %2203 = vmatpush.bf16.msra.mxu3 %v3817_v14  ;;  %v3034_v7 = vld [vmem:[#allocation4 + $0x138] sm:$0xf0]  ;;  %v4104_v14 = vld [vmem:[#allocation4 + $0xc] sm:$0xf] }
 0x138   :  { %v3037_v13 = vor.u32 %v4140_v6, %v3034_v7  ;;  %v2893_v29 = vor.u32 %v4104_v14, %v2890_v15  ;;  %v3162_v6 = vld [vmem:[#allocation4 + $0x238] sm:$0xf0] }
 0x139   :  { %2214 = vmatpush.bf16.msrb.mxu0 %v2973_v17  ;;  %2190 = vmatpush.bf16.msra.mxu2 %v3673_v25  ;;  %v3229_v17 = vor.u32 %v4188_v8, %v3226_v9  ;;  %v3514_v25 = vld [vmem:[#allocation4 + $0x4f8] sm:$0xf0]  ;;  %v4204_v9 = vld [vmem:[#allocation4 + $0x32c] sm:$0xf] }
 0x13a   :  { %v3517_v35 = vor.u32 %v4260_v24, %v3514_v25  ;;  %v4276_v24 = vld [vmem:[#allocation4 + $0x56c] sm:$0xf]  ;;  %v3578_v25 = vld [vmem:[#allocation4 + $0x578] sm:$0xf0] }
 0x13b   :  { %2228 = vmatpush.bf16.msrb.mxu1 %v3101_v18  ;;  %2204 = vmatpush.bf16.msra.mxu3 %v3801_v27  ;;  %v3357_v18 = vor.u32 %v4220_v10, %v3354_v11  ;;  %v4292_v27 = vld [vmem:[#allocation4 + $0x5ec] sm:$0xf]  ;;  %v3290_v10 = vld [vmem:[#allocation4 + $0x338] sm:$0xf0] }
 0x13c   :  { %v3645_v37 = vor.u32 %v4292_v27, %v3642_v28  ;;  %v4248_v11 = vld [vmem:[#allocation4 + $0x48c] sm:$0xf]  ;;  %v3293_v15 = vor.u32 %v4204_v9, %v3290_v10  ;;  %v4734_v9 = vld [vmem:[%s4788_s4] sm:$0xf] }
 0x13d   :  { %2215 = vmatpush.bf16.msrb.mxu0 %v2957_v31  ;;  %2191 = vmatpush.bf16.msra.mxu2 %v3657_v45  ;;  %v3213_v31 = vor.u32 %v4184_v20, %v3210_v21  ;;  %v4288_v45 = vld [vmem:[#allocation4 + $0x5cc] sm:$0xf]  ;;  %v3274_v21 = vld [vmem:[#allocation4 + $0x318] sm:$0xf0] }
 0x13e   :  { %v4324_v27 = vld [vmem:[#allocation4 + $0x6ec] sm:$0xf] }
 0x13f   :  { %2229 = vmatpush.bf16.msrb.mxu1 %v3085_v32  ;;  %2205 = vmatpush.bf16.msra.mxu3 %v3785_v46  ;;  %v3341_v32 = vor.u32 %v4216_v22, %v3338_v23  ;;  %v3626_v46 = vld [vmem:[#allocation4 + $0x5d8] sm:$0xf0]  ;;  %v4244_v22 = vld [vmem:[#allocation4 + $0x46c] sm:$0xf] }
 0x140   :  { %2192 = vmatmul.bf16.vlgmr.msra.gmra.mxu2 %v4685_v56  ;;  %v3629_v58 = vor.u32 %v4288_v45, %v3626_v46  ;;  %v3450_v23 = vld [vmem:[#allocation4 + $0x478] sm:$0xf0]  ;;  %v4272_v46 = vld [vmem:[#allocation4 + $0x54c] sm:$0xf] }
 0x141   :  { %2216 = vmatpush.bf16.msrb.mxu0 %v2941_v49  ;;  %2240 = vmatpush.bf16.msrb.mxu2 %v3261_v54  ;;  %v3197_v49 = vor.u32 %v4180_v33, %v3194_v34  ;;  %v4711_v54 = vpop.f32.mrf.mxu0 }
 0x142   :  { %2206 = vmatmul.bf16.vlgmr.msra.gmra.mxu3 %v4687_v57 }
 0x143   :  { %2230 = vmatpush.bf16.msrb.mxu1 %v3069_v50  ;;  %2254 = vmatpush.bf16.msrb.mxu3 %v3389_v55  ;;  %v3325_v50 = vor.u32 %v4212_v38, %v3322_v39  ;;  %v3501_v55 = vor.u32 %v4256_v40, %v3498_v44  ;;  %v4713_v62 = vpop.f32.mrf.mxu2  ;;  %v3581_v38 = vor.u32 %v4276_v24, %v3578_v25  ;;  %v4240_v39 = vld [vmem:[#allocation4 + $0x44c] sm:$0xf]  ;;  %v3434_v40 = vld [vmem:[#allocation4 + $0x458] sm:$0xf0] }
 0x145   :  { %2217 = vmatpush.bf16.msrb.mxu0 %v2925_v0  ;;  %2241 = vmatpush.bf16.msrb.mxu2 %v3245_v3  ;;  %v4715_v63 = vpop.f32.mrf.mxu3  ;;  %v3482_v0 = vld [vmem:[#allocation4 + $0x4b8] sm:$0xf0]  ;;  %v3309_v3 = vor.u32 %v4208_v59, %v3306_v60  ;;  %v4236_v60 = vld [vmem:[#allocation4 + $0x42c] sm:$0xf] }
 0x146   :  { %v3485_v7 = vor.u32 %v4252_v61, %v3482_v0  ;;  %v3418_v61 = vld [vmem:[#allocation4 + $0x438] sm:$0xf0] }
 0x147   :  { %2231 = vmatpush.bf16.msrb.mxu1 %v3053_v1  ;;  %2255 = vmatpush.bf16.msrb.mxu3 %v3373_v4  ;;  %v4284_v1 = vld [vmem:[#allocation4 + $0x5ac] sm:$0xf] }
 0x148   :  { %v4172_v4 = vld [vmem:[#allocation4 + $0x22c] sm:$0xf]  ;;  %v3613_v8 = vor.u32 %v4284_v1, %v3610_v5 }
 0x149   :  { %2218 = vmatpush.bf16.msrb.mxu0 %v2909_v12  ;;  %2242 = vmatpush.bf16.msrb.mxu2 %v3229_v17  ;;  %v3466_v12 = vld [vmem:[#allocation4 + $0x498] sm:$0xf0]  ;;  %v3165_v14 = vor.u32 %v4172_v4, %v3162_v6  ;;  %v4721_v28 = vpop.f32.mrf.mxu0  ;;  %v4316_v4 = vld [vmem:[#allocation4 + $0x6ac] sm:$0xf] }
 0x14a   :  { %v3146_v17 = vld [vmem:[#allocation4 + $0x218] sm:$0xf0]  ;;  %v3469_v19 = vor.u32 %v4248_v11, %v3466_v12  ;;  %v3421_v11 = vor.u32 %v4236_v60, %v3418_v61 }
 0x14b   :  { %2232 = vmatpush.bf16.msrb.mxu1 %v3037_v13  ;;  %2256 = vmatpush.bf16.msrb.mxu3 %v3357_v18  ;;  %v3594_v13 = vld [vmem:[#allocation4 + $0x598] sm:$0xf0]  ;;  %v4200_v18 = vld [vmem:[#allocation4 + $0x30c] sm:$0xf]  ;;  %v3149_v34 = vor.u32 %v4168_v16, %v3146_v17 }
 0x14c   :  { %v3738_v6 = vld [vmem:[#allocation4 + $0x6b8] sm:$0xf0]  ;;  %v4264_v16 = vld [vmem:[#allocation4 + $0x50c] sm:$0xf] }
 0x14d   :  { %2219 = vmatpush.bf16.msrb.mxu0 %v2893_v29  ;;  %2243 = vmatpush.bf16.msrb.mxu2 %v3213_v31  ;;  %v3770_v29 = vld [vmem:[#allocation4 + $0x6f8] sm:$0xf0]  ;;  %v4725_v33 = vpop.f32.mrf.mxu3 }
 0x14e   :  { %v3898_v31 = vld [vmem:[#allocation4 + $0x7f8] sm:$0xf0]  ;;  %v3773_v44 = vor.u32 %v4324_v27, %v3770_v29 }
 0x14f   :  { %2233 = vmatpush.bf16.msrb.mxu1 %v3021_v30  ;;  %2257 = vmatpush.bf16.msrb.mxu3 %v3341_v32  ;;  %v4356_v30 = vld [vmem:[#allocation4 + $0x7ec] sm:$0xf]  ;;  %v4723_v32 = vpop.f32.mrf.mxu2  ;;  %v3530_v17 = vld [vmem:[#allocation4 + $0x518] sm:$0xf0] }
 0x150   :  { %2220 = vmatmul.bf16.vlgmr.msrb.gmra.mxu0 %v4661_v48  ;;  %v4280_v48 = vld [vmem:[#allocation4 + $0x58c] sm:$0xf]  ;;  %v3901_v45 = vor.u32 %v4356_v30, %v3898_v31  ;;  %v3533_v24 = vor.u32 %v4264_v16, %v3530_v17  ;;  %v4366_v29 = vld [vmem:[#allocation6 + $0x38] sm:$0xff] }
 0x151   :  { %2268 = vmatpush.bf16.msra.mxu0 %v3517_v35  ;;  %2244 = vmatpush.bf16.msrb.mxu2 %v3197_v49  ;;  %v3597_v20 = vor.u32 %v4280_v48, %v3594_v13  ;;  %v3277_v35 = vor.u32 %v4200_v18, %v3274_v21  ;;  %v3562_v49 = vld [vmem:[#allocation4 + $0x558] sm:$0xf0]  ;;  %v4736_v10 = vpop.f32.mrf.mxu0  ;;  %v4232_v48 = vld [vmem:[#allocation4 + $0x40c] sm:$0xf] }
 0x152   :  { %2234 = vmatmul.bf16.vlgmr.msrb.gmra.mxu1 %v4663_v52  ;;  %v4719_v52 = vpop.f32.mrf.mxu1  ;;  %v3565_v59 = vor.u32 %v4272_v46, %v3562_v49  ;;  %v3402_v13 = vld [vmem:[#allocation4 + $0x418] sm:$0xf0]  ;;  %v4312_v18 = vld [vmem:[#allocation4 + $0x68c] sm:$0xf]  ;;  %v4365_v46 = vld [vmem:[#allocation6 + $0x30] sm:$0xff] }
 0x153   :  { %2282 = vmatpush.bf16.msra.mxu1 %v3645_v37  ;;  %2258 = vmatpush.bf16.msrb.mxu3 %v3325_v50  ;;  %v3453_v37 = vor.u32 %v4244_v22, %v3450_v23  ;;  %v4320_v50 = vld [vmem:[#allocation4 + $0x6cc] sm:$0xf]  ;;  %v3850_v21 = vld [vmem:[#allocation4 + $0x798] sm:$0xf0]  ;;  %v588_v22 = vperm.slane %v4734_v9, 0  ;;  %v3405_v23 = vor.u32 %v4232_v48, %v3402_v13 }
 0x154   :  { %v3757_v1 = vor.u32 %v4320_v50, %v3754_v51  ;;  %v4308_v30 = vld [vmem:[#allocation4 + $0x66c] sm:$0xf]  ;;  %v3706_v31 = vld [vmem:[#allocation4 + $0x678] sm:$0xf0] }
 0x155   :  { %2269 = vmatpush.bf16.msra.mxu0 %v3501_v55  ;;  %2245 = vmatpush.bf16.msrb.mxu2 %v3181_v2  ;;  %v3882_v55 = vld [vmem:[#allocation4 + $0x7d8] sm:$0xf0]  ;;  %v4268_v2 = vld [vmem:[#allocation4 + $0x52c] sm:$0xf] }
 0x156   :  { %v3885_v5 = vor.u32 %v4352_v53, %v3882_v55  ;;  %v4304_v49 = vld [vmem:[#allocation4 + $0x64c] sm:$0xf]  ;;  %v3690_v50 = vld [vmem:[#allocation4 + $0x658] sm:$0xf0] }
 0x157   :  { %2283 = vmatpush.bf16.msra.mxu1 %v3629_v58  ;;  %2259 = vmatpush.bf16.msrb.mxu3 %v3309_v3  ;;  %v3437_v58 = vor.u32 %v4240_v39, %v3434_v40  ;;  %v3546_v3 = vld [vmem:[#allocation4 + $0x538] sm:$0xf0]  ;;  %v1886_v40 = vadd.f32 %v4707_v26, %v588_v22  ;;  %v4336_v53 = vld [vmem:[#allocation4 + $0x74c] sm:$0xf] }
 0x158   :  { %v3549_v12 = vor.u32 %v4268_v2, %v3546_v3  ;;  %v3818_v55 = vld [vmem:[#allocation4 + $0x758] sm:$0xf0]  ;;  %v4364_v2 = vld [vmem:[#allocation6 + $0x28] sm:$0xff] }
 0x159   :  { %2270 = vmatpush.bf16.msra.mxu0 %v3485_v7  ;;  %2246 = vmatpush.bf16.msrb.mxu2 %v3165_v14  ;;  %v4348_v7 = vld [vmem:[#allocation4 + $0x7ac] sm:$0xf]  ;;  %v4738_v14 = vpop.f32.mrf.mxu2  ;;  %v1997_v51 = vpop.f32.mrf.mxu0  ;;  %v1900_v26 = vadd.f32 %v4709_v43, %v1886_v40  ;;  %v3658_v48 = vld [vmem:[#allocation4 + $0x618] sm:$0xf0] }
 0x15a   :  { %v4727_v0 = vpop.f32.mrf.mxu1  ;;  %v4300_v3 = vld [vmem:[#allocation4 + $0x62c] sm:$0xf] }
 0x15b   :  { %2284 = vmatpush.bf16.msra.mxu1 %v3613_v8  ;;  %2260 = vmatpush.bf16.msrb.mxu3 %v3293_v15  ;;  %v3866_v8 = vld [vmem:[#allocation4 + $0x7b8] sm:$0xf0]  ;;  %v4328_v13 = vld [vmem:[#allocation4 + $0x70c] sm:$0xf] }
 0x15c   :  { %v3869_v15 = vor.u32 %v4348_v7, %v3866_v8  ;;  %v4372_v7 = vld [vmem:[#allocation6 + $0x68] sm:$0xff] }
 0x15d   :  { %2271 = vmatpush.bf16.msra.mxu0 %v3469_v19  ;;  %2247 = vmatpush.bf16.msrb.mxu2 %v3149_v34  ;;  %v3722_v19 = vld [vmem:[#allocation4 + $0x698] sm:$0xf0]  ;;  %v4340_v34 = vld [vmem:[#allocation4 + $0x76c] sm:$0xf] }
 0x15e   :  { %v3725_v25 = vor.u32 %v4312_v18, %v3722_v19 }
 0x15f   :  { %2285 = vmatpush.bf16.msra.mxu1 %v3597_v20  ;;  %2261 = vmatpush.bf16.msrb.mxu3 %v3277_v35  ;;  %v4344_v20 = vld [vmem:[#allocation4 + $0x78c] sm:$0xf]  ;;  %v3834_v35 = vld [vmem:[#allocation4 + $0x778] sm:$0xf0] }
 0x160   :  { %2248 = vmatmul.bf16.vlgmr.msrb.gmra.mxu2 %v4675_v42  ;;  %v4740_v42 = vpop.f32.mrf.mxu3  ;;  %v3853_v27 = vor.u32 %v4344_v20, %v3850_v21  ;;  %v589_v21 = vperm.slane %v4734_v9, 1 }
 0x161   :  { %2272 = vmatpush.bf16.msra.mxu0 %v3453_v37  ;;  %2296 = vmatpush.bf16.msra.mxu2 %v3773_v44  ;;  %v4374_v37 = vld [vmem:[#allocation6 + $0x78] sm:$0xff]  ;;  %v3709_v44 = vor.u32 %v4308_v30, %v3706_v31  ;;  %v1999_v17 = vpop.f32.mrf.mxu0 }
 0x162   :  { %2262 = vmatmul.bf16.vlgmr.msrb.gmra.mxu3 %v4677_v47  ;;  %v3741_v47 = vor.u32 %v4316_v4, %v3738_v6  ;;  %v4744_v39 = vpop.f32.mrf.mxu1  ;;  %v3674_v4 = vld [vmem:[#allocation4 + $0x638] sm:$0xf0] }
 0x163   :  { %2286 = vmatpush.bf16.msra.mxu1 %v3581_v38  ;;  %2310 = vmatpush.bf16.msra.mxu3 %v3901_v45  ;;  %v1888_v38 = vadd.f32 %v4711_v54, %v588_v22  ;;  %v3837_v45 = vor.u32 %v4340_v34, %v3834_v35  ;;  %v3802_v6 = vld [vmem:[#allocation4 + $0x738] sm:$0xf0]  ;;  %v3677_v43 = vor.u32 %v4300_v3, %v3674_v4 }
 0x164   :  { %v4362_v22 = vld [vmem:[#allocation6 + $0x18] sm:$0xff] }
 0x165   :  { %2273 = vmatpush.bf16.msra.mxu0 %v3437_v58  ;;  %2297 = vmatpush.bf16.msra.mxu2 %v3757_v1  ;;  %v4373_v58 = vld [vmem:[#allocation6 + $0x70] sm:$0xff]  ;;  %v1902_v54 = vadd.f32 %v4719_v52, %v1888_v38  ;;  %v3693_v1 = vor.u32 %v4304_v49, %v3690_v50  ;;  %v4332_v52 = vld [vmem:[#allocation4 + $0x72c] sm:$0xf] }
 0x166   :  { %v4360_v38 = vld [vmem:[#allocation6 + $0x8] sm:$0xff] }
 0x167   :  { %2287 = vmatpush.bf16.msra.mxu1 %v3565_v59  ;;  %2311 = vmatpush.bf16.msra.mxu3 %v3885_v5  ;;  %v1971_v59 = vpop.f32.mrf.mxu2  ;;  %v1916_v61 = vadd.f32 %v4723_v32, %v1902_v54  ;;  %v3821_v5 = vor.u32 %v4336_v53, %v3818_v55  ;;  %v3805_v32 = vor.u32 %v4332_v52, %v3802_v6 }
 0x168   :  { %v4748_v60 = vpop.f32.mrf.mxu3 }
 0x169   :  { %2274 = vmatpush.bf16.msra.mxu0 %v3421_v11  ;;  %2298 = vmatpush.bf16.msra.mxu2 %v3741_v47  ;;  %v4363_v11 = vld [vmem:[#allocation6 + $0x20] sm:$0xff]  ;;  %v3786_v47 = vld [vmem:[#allocation4 + $0x718] sm:$0xf0] }
 0x16a   :  { %v2011_v8 = vpop.f32.mrf.mxu1  ;;  %v3789_v20 = vor.u32 %v4328_v13, %v3786_v47  ;;  %v4378_v13 = vld [vmem:[#allocation6 + $0x98] sm:$0xff] }
 0x16b   :  { %2288 = vmatpush.bf16.msra.mxu1 %v3549_v12  ;;  %2312 = vmatpush.bf16.msra.mxu3 %v3869_v15  ;;  %v4296_v12 = vld [vmem:[#allocation4 + $0x60c] sm:$0xf]  ;;  %v4371_v15 = vld [vmem:[#allocation6 + $0x60] sm:$0xff] }
 0x16c   :  { %v3661_v19 = vor.u32 %v4296_v12, %v3658_v48  ;;  %v4380_v12 = vld [vmem:[#allocation6 + $0xa8] sm:$0xff]  ;;  %v4379_v48 = vld [vmem:[#allocation6 + $0xa0] sm:$0xff] }
 0x16d   :  { %2275 = vmatpush.bf16.msra.mxu0 %v3405_v23  ;;  %2299 = vmatpush.bf16.msra.mxu2 %v3725_v25  ;;  %v4370_v23 = vld [vmem:[#allocation6 + $0x58] sm:$0xff]  ;;  %v2053_v34 = vpop.f32.mrf.mxu0 }
 0x16f   :  { %2289 = vmatpush.bf16.msra.mxu1 %v3533_v24  ;;  %2313 = vmatpush.bf16.msra.mxu3 %v3853_v27  ;;  %v2025_v18 = vpop.f32.mrf.mxu2  ;;  %v4369_v27 = vld [vmem:[#allocation6 + $0x50] sm:$0xff] }
 0x170   :  { %2276 = vmatmul.bf16.vlgmr.msra.gmra.mxu0 %v4671_v36  ;;  %v1914_v36 = vadd.f32 %v4713_v62, %v1900_v26 }
 0x171   :  { %2596 = vmatpush.bf16.msrb.mxu0 %v4366_v29  ;;  %2300 = vmatpush.bf16.msra.mxu2 %v3709_v44 }
 0x172   :  { %2290 = vmatmul.bf16.vlgmr.msra.gmra.mxu1 %v4673_v41  ;;  %v1930_v41 = vadd.f32 %v4725_v33, %v1916_v61  ;;  %v1928_v16 = vadd.f32 %v4715_v63, %v1914_v36  ;;  %v2039_v33 = vpop.f32.mrf.mxu3  ;;  %v1998_v63 = vadd.f32 %v1997_v51, %v589_v21  ;;  %v2013_v30 = vpop.f32.mrf.mxu1 }
 0x173   :  { %2610 = vmatpush.bf16.msrb.mxu1 %v4374_v37  ;;  %2314 = vmatpush.bf16.msra.mxu3 %v3837_v45  ;;  %v2000_v37 = vadd.f32 %v1999_v17, %v589_v21  ;;  %v4376_v17 = vld [vmem:[#allocation6 + $0x88] sm:$0xff] }
 0x174   :  { %v1944_v62 = vadd.f32 %v4736_v10, %v1930_v41  ;;  %v1942_v24 = vadd.f32 %v4721_v28, %v1928_v16  ;;  %v4361_v10 = vld [vmem:[#allocation6 + $0x10] sm:$0xff]  ;;  %v2012_v35 = vadd.f32 %v2011_v8, %v1998_v63 }
 0x175   :  { %2597 = vmatpush.bf16.msrb.mxu0 %v4365_v46  ;;  %2301 = vmatpush.bf16.msra.mxu2 %v3693_v1  ;;  %v2014_v49 = vadd.f32 %v2013_v30, %v2000_v37  ;;  %v2055_v54 = vpop.f32.mrf.mxu0 }
 0x176   :  { %v1958_v25 = vadd.f32 %v4744_v39, %v1944_v62  ;;  %v1956_v29 = vadd.f32 %v4727_v0, %v1942_v24  ;;  %v4368_v39 = vld [vmem:[#allocation6 + $0x48] sm:$0xff]  ;;  %v2026_v0 = vadd.f32 %v2025_v18, %v2012_v35 }
 0x177   :  { %2611 = vmatpush.bf16.msrb.mxu1 %v4373_v58  ;;  %2315 = vmatpush.bf16.msra.mxu3 %v3821_v5  ;;  %v2027_v44 = vpop.f32.mrf.mxu2 }
 0x178   :  { %v1972_v31 = vadd.f32 %v1971_v59, %v1958_v25  ;;  %v1970_v28 = vadd.f32 %v4738_v14, %v1956_v29  ;;  %v2040_v51 = vadd.f32 %v2039_v33, %v2026_v0  ;;  %v2028_v53 = vadd.f32 %v2027_v44, %v2014_v49 }
 0x179   :  { %2598 = vmatpush.bf16.msrb.mxu0 %v4364_v2  ;;  %2302 = vmatpush.bf16.msra.mxu2 %v3677_v43  ;;  %v4382_v43 = vld [vmem:[#allocation6 + $0xb8] sm:$0xff] }
 0x17a   :  { %v1986_v40 = vadd.f32 %v4748_v60, %v1972_v31  ;;  %v2041_v45 = vpop.f32.mrf.mxu3  ;;  %v1984_v46 = vadd.f32 %v4740_v42, %v1970_v28  ;;  %v2067_v14 = vpop.f32.mrf.mxu1  ;;  %v2054_v58 = vadd.f32 %v2053_v34, %v2040_v51  ;;  %v4390_v51 = vld [vmem:[#allocation6 + $0xf8] sm:$0xff] }
 0x17b   :  { %2612 = vmatpush.bf16.msrb.mxu1 %v4372_v7  ;;  %2316 = vmatpush.bf16.msra.mxu3 %v3805_v32  ;;  %v2042_v61 = vadd.f32 %v2041_v45, %v2028_v53 }
 0x17c   :  { %v2328_v50 = vmax.f32 %v1986_v40, 0.0  ;;  %v2324_v55 = vmax.f32 %v1984_v46, 0.0  ;;  %v2068_v42 = vadd.f32 %v2067_v14, %v2054_v58 }
 0x17d   :  { %2599 = vmatpush.bf16.msrb.mxu0 %v4363_v11  ;;  %2303 = vmatpush.bf16.msra.mxu2 %v3661_v19  ;;  %v2056_v1 = vadd.f32 %v2055_v54, %v2042_v61  ;;  %v4381_v11 = vld [vmem:[#allocation6 + $0xb0] sm:$0xff]  ;;  %v4375_v19 = vld [vmem:[#allocation6 + $0x80] sm:$0xff] }
 0x17e   :  { %v2332_v59 = vpack.c.bf16 %v2328_v50, %v2324_v55  ;;  %v4389_v54 = vld [vmem:[#allocation6 + $0xf0] sm:$0xff] }
 0x17f   :  { %2613 = vmatpush.bf16.msrb.mxu1 %v4371_v15  ;;  %2317 = vmatpush.bf16.msra.mxu3 %v3789_v20  ;;  %v4377_v15 = vld [vmem:[#allocation6 + $0x90] sm:$0xff]  ;;  %v590_v20 = vperm.slane %v4734_v9, 2 }
 0x180   :  { %2304 = vmatmul.bf16.vlgmr.msra.gmra.mxu2 %v4685_v56  ;;  %v4359_v56 = vld [vmem:[#allocation6] sm:$0xff] }
 0x181   :  { %2600 = vmatpush.bf16.msrb.mxu0 %v4362_v22  ;;  %2624 = vmatpush.bf16.msrb.mxu2 %v4382_v43 }
 0x182   :  { %2318 = vmatmul.bf16.vlgmr.msra.gmra.mxu3 %v4687_v57  ;;  %v4367_v57 = vld [vmem:[#allocation6 + $0x40] sm:$0xff]  ;;  %v2069_v2 = vpop.f32.mrf.mxu1 }
 0x183   :  { %2614 = vmatpush.bf16.msrb.mxu1 %v4370_v23  ;;  %v2081_v60 = vpop.f32.mrf.mxu2  ;;  %v2070_v3 = vadd.f32 %v2069_v2, %v2056_v1  ;;  %2638 = vmatpush.bf16.msrb.mxu3 %v4390_v51  ;;  %v4384_v1 = vld [vmem:[#allocation6 + $0xc8] sm:$0xff]  ;;  %v4383_v2 = vld [vmem:[#allocation6 + $0xc0] sm:$0xff] }
 0x184   :  { %v2082_v5 = vadd.f32 %v2081_v60, %v2068_v42  ;;  %v4387_v60 = vld [vmem:[#allocation6 + $0xe0] sm:$0xff]  ;;  %v4385_v42 = vld [vmem:[#allocation6 + $0xd0] sm:$0xff] }
 0x185   :  { %2601 = vmatpush.bf16.msrb.mxu0 %v4361_v10  ;;  %v2095_v26 = vpop.f32.mrf.mxu3  ;;  %2625 = vmatpush.bf16.msrb.mxu2 %v4381_v11 }
 0x186   :  { %v2096_v52 = vadd.f32 %v2095_v26, %v2082_v5  ;;  %v4386_v26 = vld [vmem:[#allocation6 + $0xd8] sm:$0xff] }
 0x187   :  { %2615 = vmatpush.bf16.msrb.mxu1 %v4369_v27  ;;  %2639 = vmatpush.bf16.msrb.mxu3 %v4389_v54 }
 0x188   :  { %v2325_v41 = vmax.f32 %v2096_v52, 0.0 }
 0x189   :  { %2602 = vmatpush.bf16.msrb.mxu0 %v4360_v38  ;;  %2626 = vmatpush.bf16.msrb.mxu2 %v4380_v12 }
 0x18b   :  { %2616 = vmatpush.bf16.msrb.mxu1 %v4368_v39  ;;  %v2083_v4 = vpop.f32.mrf.mxu2 }
 0x18c   :  { %v2084_v6 = vadd.f32 %v2083_v4, %v2070_v3 }
 0x18d   :  { %2603 = vmatpush.bf16.msrb.mxu0 %v4359_v56  ;;  %v2097_v7 = vpop.f32.mrf.mxu3  ;;  %2627 = vmatpush.bf16.msrb.mxu2 %v4379_v48  ;;  %v2109_v47 = vpop.f32.mrf.mxu0 }
 0x18e   :  { %v2098_v36 = vadd.f32 %v2097_v7, %v2084_v6  ;;  %v2110_v21 = vadd.f32 %v2109_v47, %v590_v20  ;;  %v591_v6 = vperm.slane %v4734_v9, 3 }
 0x18f   :  { %2617 = vmatpush.bf16.msrb.mxu1 %v4367_v57  ;;  %v2123_v16 = vpop.f32.mrf.mxu1 }
 0x190   :  { %2604 = vmatmul.bf16.vlgmr.msrb.gmra.mxu0 %v2332_v59  ;;  %v2329_v8 = vmax.f32 %v2098_v36, 0.0  ;;  %v2124_v24 = vadd.f32 %v2123_v16, %v2110_v21  ;;  %v4388_v59 = vld [vmem:[#allocation6 + $0xe8] sm:$0xff] }
 0x191   :  { %2628 = vmatpush.bf16.msrb.mxu2 %v4378_v13  ;;  %2640 = vmatpush.bf16.msrb.mxu3 %v4388_v59 }
 0x192   :  { %v2333_v32 = vpack.c.bf16 %v2329_v8, %v2325_v41 }
 0x194   :  { %2618 = vmatmul.bf16.vlgmr.msrb.gmra.mxu1 %v2333_v32 }
 0x195   :  { %2629 = vmatpush.bf16.msrb.mxu2 %v4377_v15  ;;  %v2111_v62 = vpop.f32.mrf.mxu0  ;;  %2641 = vmatpush.bf16.msrb.mxu3 %v4387_v60 }
 0x196   :  { %v2112_v25 = vadd.f32 %v2111_v62, %v590_v20 }
 0x197   :  { %v2125_v22 = vpop.f32.mrf.mxu1 }
 0x198   :  { %v2126_v29 = vadd.f32 %v2125_v22, %v2112_v25 }
 0x199   :  { %2630 = vmatpush.bf16.msrb.mxu2 %v4376_v17  ;;  %2642 = vmatpush.bf16.msrb.mxu3 %v4386_v26 }
 0x19d   :  { %2631 = vmatpush.bf16.msrb.mxu2 %v4375_v19  ;;  %2643 = vmatpush.bf16.msrb.mxu3 %v4385_v42 }
 0x1a1   :  { %2644 = vmatpush.bf16.msrb.mxu3 %v4384_v1 }
 0x1a3   :  { %v2137_v18 = vpop.f32.mrf.mxu2 }
 0x1a4   :  { %v2138_v27 = vadd.f32 %v2137_v18, %v2124_v24 }
 0x1a5   :  { %v2151_v33 = vpop.f32.mrf.mxu3  ;;  %2645 = vmatpush.bf16.msrb.mxu3 %v4383_v2 }
 0x1a6   :  { %v2152_v31 = vadd.f32 %v2151_v33, %v2138_v27 }
 0x1ab   :  { %v2139_v63 = vpop.f32.mrf.mxu2 }
 0x1ac   :  { %v2140_v34 = vadd.f32 %v2139_v63, %v2126_v29 }
 0x1ad   :  { %v2165_v23 = vpop.f32.mrf.mxu0  ;;  %v2153_v10 = vpop.f32.mrf.mxu3 }
 0x1ae   :  { %v2166_v28 = vadd.f32 %v2165_v23, %v2152_v31  ;;  %v2154_v39 = vadd.f32 %v2153_v10, %v2140_v34  ;;  %v4398_v31 = vld [vmem:[#allocation7 + $0x38] sm:$0xff]  ;;  %v4397_v34 = vld [vmem:[#allocation7 + $0x30] sm:$0xff] }
 0x1af   :  { %v2179_v30 = vpop.f32.mrf.mxu1  ;;  %2723 = vmatpush.bf16.msra.mxu0 %v4398_v31 }
 0x1b0   :  { %v2180_v40 = vadd.f32 %v2179_v30, %v2166_v28  ;;  %v4396_v28 = vld [vmem:[#allocation7 + $0x28] sm:$0xff] }
 0x1b3   :  { %2724 = vmatpush.bf16.msra.mxu0 %v4397_v34 }
 0x1b5   :  { %v2167_v35 = vpop.f32.mrf.mxu0 }
 0x1b6   :  { %v2168_v44 = vadd.f32 %v2167_v35, %v2154_v39  ;;  %v4395_v35 = vld [vmem:[#allocation7 + $0x20] sm:$0xff]  ;;  %v4392_v39 = vld [vmem:[#allocation7 + $0x8] sm:$0xff] }
 0x1b7   :  { %v2181_v0 = vpop.f32.mrf.mxu1  ;;  %2725 = vmatpush.bf16.msra.mxu0 %v4396_v28 }
 0x1b8   :  { %v2182_v46 = vadd.f32 %v2181_v0, %v2168_v44  ;;  %v4406_v44 = vld [vmem:[#allocation9 + $0x38] sm:$0xff]  ;;  %v4404_v0 = vld [vmem:[#allocation9 + $0x28] sm:$0xff] }
 0x1b9   :  { %2804 = vmatpush.bf16.msra.mxu1 %v4406_v44 }
 0x1bb   :  { %2726 = vmatpush.bf16.msra.mxu0 %v4395_v35 }
 0x1c3   :  { %v2193_v37 = vpop.f32.mrf.mxu2 }
 0x1c4   :  { %v2194_v45 = vadd.f32 %v2193_v37, %v2180_v40  ;;  %v4394_v37 = vld [vmem:[#allocation7 + $0x18] sm:$0xff]  ;;  %v4391_v40 = vld [vmem:[#allocation7] sm:$0xff] }
 0x1c5   :  { %v2207_v38 = vpop.f32.mrf.mxu3  ;;  %2727 = vmatpush.bf16.msra.mxu0 %v4394_v37 }
 0x1c6   :  { %v2208_v56 = vadd.f32 %v2207_v38, %v2194_v45  ;;  %v4393_v38 = vld [vmem:[#allocation7 + $0x10] sm:$0xff] }
 0x1c7   :  { %v4405_v45 = vld [vmem:[#allocation9 + $0x30] sm:$0xff] }
 0x1c8   :  { %v2326_v53 = vmax.f32 %v2208_v56, 0.0  ;;  %2805 = vmatpush.bf16.msra.mxu1 %v4405_v45  ;;  %v4403_v56 = vld [vmem:[#allocation9 + $0x20] sm:$0xff] }
 0x1c9   :  { %2728 = vmatpush.bf16.msra.mxu0 %v4393_v38 }
 0x1cb   :  { %v2195_v49 = vpop.f32.mrf.mxu2 }
 0x1cc   :  { %v2196_v57 = vadd.f32 %v2195_v49, %v2182_v46  ;;  %2806 = vmatpush.bf16.msra.mxu1 %v4404_v0 }
 0x1cd   :  { %v2209_v50 = vpop.f32.mrf.mxu3  ;;  %v2221_v61 = vpop.f32.mrf.mxu0  ;;  %2729 = vmatpush.bf16.msra.mxu0 %v4392_v39 }
 0x1ce   :  { %v2210_v14 = vadd.f32 %v2209_v50, %v2196_v57  ;;  %v2222_v7 = vadd.f32 %v2221_v61, %v591_v6  ;;  %v4418_v50 = vld [vmem:[%s4790_s6] ss:$0 sm:$0xff] }
 0x1cf   :  { %v2235_v5 = vpop.f32.mrf.mxu1 }
 0x1d0   :  { %v2330_v55 = vmax.f32 %v2210_v14, 0.0  ;;  %v2236_v8 = vadd.f32 %v2235_v5, %v2222_v7  ;;  %2807 = vmatpush.bf16.msra.mxu1 %v4403_v56  ;;  %v4400_v7 = vld [vmem:[#allocation9 + $0x8] sm:$0xff] }
 0x1d1   :  { %2730 = vmatpush.bf16.msra.mxu0 %v4391_v40 }
 0x1d2   :  { %v2334_v58 = vpack.c.bf16 %v2330_v55, %v2326_v53 }
 0x1d4   :  { %2632 = vmatmul.bf16.vlgmr.msrb.gmra.mxu2 %v2334_v58 }
 0x1d5   :  { %v2223_v3 = vpop.f32.mrf.mxu0 }
 0x1d6   :  { %v2224_v43 = vadd.f32 %v2223_v3, %v591_v6  ;;  %v4401_v6 = vld [vmem:[#allocation9 + $0x10] sm:$0xff] }
 0x1d7   :  { %v2237_v36 = vpop.f32.mrf.mxu1 }
 0x1d8   :  { %v2238_v48 = vadd.f32 %v2237_v36, %v2224_v43  ;;  %v4399_v36 = vld [vmem:[#allocation9] sm:$0xff] }
 0x1e3   :  { %v2249_v4 = vpop.f32.mrf.mxu2 }
 0x1e4   :  { %v2250_v12 = vadd.f32 %v2249_v4, %v2236_v8  ;;  %v4419_v8 = vld [vmem:[%s4792_s8] ss:$0 sm:$0xff] }
 0x1e5   :  { %v2263_v52 = vpop.f32.mrf.mxu3 }
 0x1e6   :  { %v2264_v47 = vadd.f32 %v2263_v52, %v2250_v12  ;;  %v4402_v52 = vld [vmem:[#allocation9 + $0x18] sm:$0xff] }
 0x1e7   :  { %2808 = vmatpush.bf16.msra.mxu1 %v4402_v52 }
 0x1eb   :  { %v2251_v32 = vpop.f32.mrf.mxu2  ;;  %2809 = vmatpush.bf16.msra.mxu1 %v4401_v6 }
 0x1ec   :  { %v2252_v15 = vadd.f32 %v2251_v32, %v2238_v48 }
 0x1ed   :  { %v2277_v41 = vpop.f32.mrf.mxu0  ;;  %v2265_v11 = vpop.f32.mrf.mxu3 }
 0x1ee   :  { %v2278_v16 = vadd.f32 %v2277_v41, %v2264_v47  ;;  %v2266_v33 = vadd.f32 %v2265_v11, %v2252_v15  ;;  %v4420_v47 = vld [vmem:[%s4794_s10] ss:$0 sm:$0xff] }
 0x1ef   :  { %v2291_v13 = vpop.f32.mrf.mxu1  ;;  %2810 = vmatpush.bf16.msra.mxu1 %v4400_v7 }
 0x1f0   :  { %v2292_v19 = vadd.f32 %v2291_v13, %v2278_v16 }
 0x1f3   :  { %2811 = vmatpush.bf16.msra.mxu1 %v4399_v36 }
 0x1f5   :  { %v2279_v17 = vpop.f32.mrf.mxu0 }
 0x1f6   :  { %v2280_v20 = vadd.f32 %v2279_v17, %v2266_v33 }
 0x1f7   :  { %v2293_v21 = vpop.f32.mrf.mxu1 }
 0x1f8   :  { %v2294_v22 = vadd.f32 %v2293_v21, %v2280_v20 }
 0x203   :  { %v2305_v62 = vpop.f32.mrf.mxu2 }
 0x204   :  { %v2306_v9 = vadd.f32 %v2305_v62, %v2292_v19 }
 0x205   :  { %v2319_v18 = vpop.f32.mrf.mxu3 }
 0x206   :  { %v2320_v24 = vadd.f32 %v2319_v18, %v2306_v9 }
 0x208   :  { %v2327_v27 = vmax.f32 %v2320_v24, 0.0 }
 0x20b   :  { %v2307_v23 = vpop.f32.mrf.mxu2 }
 0x20c   :  { %v2308_v25 = vadd.f32 %v2307_v23, %v2294_v22 }
 0x20d   :  { %v2321_v63 = vpop.f32.mrf.mxu3  ;;  %v2605_v46 = vpop.f32.mrf.mxu0 }
 0x20e   :  { %v2322_v10 = vadd.f32 %v2321_v63, %v2308_v25  ;;  %v2606_v53 = vadd.f32 %v4418_v50, %v2605_v46 }
 0x210   :  { %v2331_v29 = vmax.f32 %v2322_v10, 0.0 }
 0x211   :  { %v2619_v49 = vpop.f32.mrf.mxu1 }
 0x212   :  { %v2335_v30 = vpack.c.bf16 %v2331_v29, %v2327_v27  ;;  %v2620_v54 = vadd.f32 %v2619_v49, %v2606_v53 }
 0x214   :  { %2646 = vmatmul.bf16.vlgmr.msrb.gmra.mxu3 %v2335_v30 }
 0x215   :  { %v2607_v14 = vpop.f32.mrf.mxu0 }
 0x216   :  { %v2608_v58 = vadd.f32 %v4418_v50, %v2607_v14 }
 0x219   :  { %v2621_v55 = vpop.f32.mrf.mxu1 }
 0x21a   :  { %v2622_v60 = vadd.f32 %v2621_v55, %v2608_v58 }
 0x257   :  { %v2633_v57 = vpop.f32.mrf.mxu2 }
 0x258   :  { %v2634_v26 = vadd.f32 %v2633_v57, %v2620_v54 }
 0x25f   :  { %v2635_v59 = vpop.f32.mrf.mxu2 }
 0x260   :  { %v2636_v61 = vadd.f32 %v2635_v59, %v2622_v60 }
 0x297   :  { %v2647_v51 = vpop.f32.mrf.mxu3 }
 0x298   :  { %v2648_v42 = vadd.f32 %v2647_v51, %v2634_v26 }
 0x29a   :  { %v2652_v2 = vmax.f32 %v2648_v42, 0.0 }
 0x29f   :  { %v2649_v1 = vpop.f32.mrf.mxu3 }
 0x2a0   :  { %v2650_v5 = vadd.f32 %v2649_v1, %v2636_v61 }
 0x2a2   :  { %v2653_v3 = vmax.f32 %v2650_v5, 0.0 }
 0x2a4   :  { %v2654_v4 = vpack.c.bf16 %v2653_v3, %v2652_v2 }
 0x2a6   :  { %2731 = vmatmul.bf16.vlgmr.msra.gmra.mxu0 %v2654_v4 }
 0x323   :  { %v2732_v41 = vpop.f32.mrf.mxu0 }
 0x324   :  { %v2733_v43 = vadd.f32 %v4419_v8, %v2732_v41 }
 0x326   :  { %v2737_v12 = vmax.f32 %v2733_v43, 0.0 }
 0x32b   :  { %v2734_v32 = vpop.f32.mrf.mxu0 }
 0x32c   :  { %v2735_v11 = vadd.f32 %v4419_v8, %v2734_v32 }
 0x32e   :  { %v2738_v48 = vmax.f32 %v2735_v11, 0.0 }
 0x330   :  { %v2739_v13 = vpack.c.bf16 %v2738_v48, %v2737_v12 }
 0x332   :  { %2812 = vmatmul.bf16.vlgmr.msra.gmra.mxu1 %v2739_v13 }
 0x3af   :  { %v2813_v15 = vpop.f32.mrf.mxu1 }
 0x3b0   :  { %v2822_v16 = vadd.f32 %v4420_v47, %v2813_v15 }
 0x3b2   :  { %2825 = vst.msk [vmem:[%s4795_s11] sm:$0xff] %vm2824_vm1, %v2822_v16 }
 0x3b7   :  { %v2815_v17 = vpop.f32.mrf.mxu1 }
 0x3b8   :  { %v2823_v62 = vadd.f32 %v4420_v47, %v2815_v17 }
 0x3ba   :  { %2826 = vst.msk [vmem:[%s4795_s11 + $0x8] sm:$0xff] %vm2824_vm1, %v2823_v62 }
 0x3bb   :  { %2831 = vsyncpa [#allocation3], 1 }
 0x3bc   :  { %2832 = vsyncpa [#allocation5], 1 }
 0x3bd   :  { %2833 = vsyncpa [#allocation8], 1 }

</bundles_post_ra>
